<compile_context>
chip_gen: v6e
topology: v6e:2x2x1
jax: 0.10.0
libtpu: 0.0.40
codegen_flags: <defaults>
</compile_context>

<pallas_src>
import math
import numpy as np

import jax
import jax.numpy as jnp
from jax.experimental import pallas as pl
from jax.experimental.pallas import tpu as pltpu

# ---- model hyper-parameters (the "args") -----------------------------------
HIDDEN = 32          # args.hidden_units
NUM_HEADS = 2        # args.num_heads
MAXLEN = 8           # args.maxlen
NUM_BLOCKS = 2       # args.num_blocks
LLM_DIM = 64         # llm_emb.shape[1]
LLM_WEIGHT = 0.5     # args.llm_weight
NORM_FIRST = False   # args.norm_first
LN_EPS = 1e-8        # all LayerNorms in the reference use eps=1e-8
ITEM_NUM = 20
USER_NUM = 5

OUT_LANES = 128      # lane-dense logits slab width (>= 2*MAXLEN, multiple of 128)
LINEAR_ROW_TILE = 256


# ---- small helpers used inside kernels --------------------------------------
def _layernorm(x, w, b):
    m = jnp.mean(x, axis=-1, keepdims=True)
    v = jnp.mean(jnp.square(x - m), axis=-1, keepdims=True)
    return (x - m) * jax.lax.rsqrt(v + LN_EPS) * w + b


def _mm_nt(a, b):
    # a @ b.T with f32 accumulation on the MXU (contract last dims of both).
    return jax.lax.dot_general(a, b, (((1,), (1,)), ((), ())),
                               preferred_element_type=jnp.float32)


# ---- Pallas kernel: all transformer blocks + last LN + logits (fused) -------
# Packed weight layout per block:
#   W (6H, H): rows [0:3H]=in_proj (Wq;Wk;Wv), [3H:4H]=out_proj,
#              [4H:5H]=ffn conv1, [5H:6H]=ffn conv2   (all stored (out, in))
#   V (10, H): rows 0..2 = bq, bk, bv ; 3 = out_proj bias ;
#              4,5 = attn-LN w,b ; 6,7 = ffn-LN w,b ; 8,9 = ffn b1, b2
def _sasrec_kernel(seq_ref, pos_ref, neg_ref, w_ref, v_ref, ln_ref, out_ref):
    TB, L, H = seq_ref.shape
    N = TB * L
    NH = NUM_HEADS
    hd = H // NH
    scale = 1.0 / math.sqrt(hd)

    x = seq_ref[...].astype(jnp.float32).reshape(N, H)   # flattened token matrix

    row = jax.lax.broadcasted_iota(jnp.int32, (L, L), 0)
    col = jax.lax.broadcasted_iota(jnp.int32, (L, L), 1)
    allowed = (col <= row)[None, :, :]                    # causal mask (1, L, L)

    def mha(z, W, V):
        # fused QKV projections on the flattened (N, H) token matrix
        q = _mm_nt(z, W[0 * H:1 * H]) + V[0:1]
        k = _mm_nt(z, W[1 * H:2 * H]) + V[1:2]
        v = _mm_nt(z, W[2 * H:3 * H]) + V[2:3]

        # fold heads into the leading batch dim -> ONE batched matmul, ONE
        # softmax, ONE PV matmul for all heads (no per-head compute loop).
        def heads(t):
            t3 = t.reshape(TB, L, H)
            return jnp.concatenate(
                [t3[:, :, h * hd:(h + 1) * hd] for h in range(NH)], axis=0)

        qh, kh, vh = heads(q), heads(k), heads(v)          # (NH*TB, L, hd)
        s = jnp.einsum('bqd,bkd->bqk', qh, kh,
                       preferred_element_type=jnp.float32) * scale
        s = jnp.where(allowed, s, -1e30)
        s = s - jnp.max(s, axis=-1, keepdims=True)
        e = jnp.exp(s)
        p = e * pl.reciprocal(jnp.sum(e, axis=-1, keepdims=True), approx=True)
        oh = jnp.einsum('bqk,bkd->bqd', p, vh,
                        preferred_element_type=jnp.float32)  # (NH*TB, L, hd)
        o = jnp.concatenate([oh[h * TB:(h + 1) * TB] for h in range(NH)],
                            axis=-1)                          # (TB, L, H)
        return _mm_nt(o.reshape(N, H), W[3 * H:4 * H]) + V[3:4]

    def ffn(z, W, V):
        h1 = jnp.maximum(_mm_nt(z, W[4 * H:5 * H]) + V[8:9], 0.0)   # ReLU
        return _mm_nt(h1, W[5 * H:6 * H]) + V[9:10]

    for blk in range(NUM_BLOCKS):              # unrolled at trace time
        W = w_ref[blk].astype(jnp.float32)     # (6H, H)
        V = v_ref[blk].astype(jnp.float32)     # (10, H)
        aw, ab, fw, fb = V[4:5], V[5:6], V[6:7], V[7:8]
        if NORM_FIRST:
            x = x + mha(_layernorm(x, aw, ab), W, V)
            x = x + ffn(_layernorm(x, fw, fb), W, V)
        else:
            x = _layernorm(x + mha(x, W, V), aw, ab)
            x = _layernorm(x + ffn(x, W, V), fw, fb)

    # last LayerNorm + pos/neg logits, emitted as one lane-dense (TB, 128) slab
    ln = ln_ref[...].astype(jnp.float32)
    feats = _layernorm(x, ln[0:1], ln[1:2]).reshape(TB, L, H)
    plog = jnp.sum(feats * pos_ref[...].astype(jnp.float32), axis=-1)   # (TB, L)
    nlog = jnp.sum(feats * neg_ref[...].astype(jnp.float32), axis=-1)   # (TB, L)
    pad = jnp.zeros((TB, out_ref.shape[1] - 2 * L), jnp.float32)
    out_ref[...] = jnp.concatenate([plog, nlog, pad], axis=-1)


def _pick_batch_tile(B):
    # Whole batch as one tile when small; otherwise a multiple-of-8 divisor so
    # blocks stay well under the v7x default scoped VMEM (32 MiB) and >=2
    # "parallel" blocks exist for the 2 TensorCores on v7x.
    if B <= 256:
        return B
    for tb in (256, 128, 64, 32, 16, 8):
        if B % tb == 0:
            return tb
    return B  # TODO(synk): pad ragged batches instead of falling back to B.


def sasrec_blocks_and_logits(params, seqs, pos_embs, neg_embs):
    """Fused: NUM_BLOCKS transformer blocks + last LayerNorm + pos/neg logits."""
    B, L, H = seqs.shape
    assert 2 * L <= OUT_LANES
    TB = _pick_batch_tile(B)
    w, v, ln = params['blk_w'], params['blk_v'], params['last_ln']
    out = pl.pallas_call(
        _sasrec_kernel,
        out_shape=jax.ShapeDtypeStruct((B, OUT_LANES), jnp.float32),
        grid_spec=pltpu.PrefetchScalarGridSpec(
            num_scalar_prefetch=0,
            grid=(B // TB,),
            in_specs=[
                pl.BlockSpec((TB, L, H), lambda i: (i, 0, 0)),   # seqs
                pl.BlockSpec((TB, L, H), lambda i: (i, 0, 0)),   # pos embs
                pl.BlockSpec((TB, L, H), lambda i: (i, 0, 0)),   # neg embs
                pl.BlockSpec(w.shape, lambda i: (0, 0, 0)),      # packed matrices
                pl.BlockSpec(v.shape, lambda i: (0, 0, 0)),      # packed vectors
                pl.BlockSpec(ln.shape, lambda i: (0, 0)),        # last LN (2, H)
            ],
            out_specs=pl.BlockSpec((TB, OUT_LANES), lambda i: (i, 0)),
        ),
        compiler_params=pltpu.CompilerParams(dimension_semantics=("parallel",)),
    )(seqs, pos_embs, neg_embs, w, v, ln)
    return out[:, 0:L], out[:, L:2 * L]


# ---- Pallas kernel: llm_proj linear layer (row-tiled) ------------------------
def _linear_kernel(x_ref, w_ref, b_ref, o_ref):
    o_ref[...] = (_mm_nt(x_ref[...].astype(jnp.float32),
                         w_ref[...].astype(jnp.float32))
                  + b_ref[...].astype(jnp.float32)).astype(o_ref.dtype)


def llm_project(x, w, b):
    # x: (N, Din), w: (Dout, Din), b: (1, Dout) -> (N, Dout) f32
    N, Din = x.shape
    Dout = w.shape[0]
    Np = pl.cdiv(N, LINEAR_ROW_TILE) * LINEAR_ROW_TILE
    if Np != N:
        x = jnp.pad(x, ((0, Np - N), (0, 0)))
    out = pl.pallas_call(
        _linear_kernel,
        out_shape=jax.ShapeDtypeStruct((Np, Dout), jnp.float32),
        grid_spec=pltpu.PrefetchScalarGridSpec(
            num_scalar_prefetch=0,
            grid=(Np // LINEAR_ROW_TILE,),
            in_specs=[pl.BlockSpec((LINEAR_ROW_TILE, Din), lambda i: (i, 0)),
                      pl.BlockSpec((Dout, Din), lambda i: (0, 0)),
                      pl.BlockSpec((1, Dout), lambda i: (0, 0))],
            out_specs=pl.BlockSpec((LINEAR_ROW_TILE, Dout), lambda i: (i, 0)),
        ),
        compiler_params=pltpu.CompilerParams(dimension_semantics=("parallel",)),
    )(x, w, b)
    return out[:N]


# ---- SASRec forward (plain-JAX glue around the kernels) ---------------------
def sasrec_forward(params, user_ids, log_seqs, pos_seqs, neg_seqs, view):
    # user_ids is unused by the reference forward pass as well.
    log_seqs = np.asarray(log_seqs)
    B, L = log_seqs.shape
    ids_log = jnp.asarray(log_seqs, jnp.int32)
    ids_pos = jnp.asarray(pos_seqs, jnp.int32)
    ids_neg = jnp.asarray(neg_seqs, jnp.int32)

    poss = np.tile(np.arange(1, L + 1), (B, 1)) * (log_seqs != 0)
    pos_emb = params['pos_emb'][jnp.asarray(poss, jnp.int32)]       # (B, L, H)

    # ---- cf view: embed + fused blocks/LN/logits kernel ----
    seqs_cf = params['item_emb'][ids_log] * math.sqrt(HIDDEN) + pos_emb
    # emb_dropout: identity in eval mode
    pos_embs = params['item_emb'][ids_pos]
    neg_embs = params['item_emb'][ids_neg]
    pos_logits, neg_logits = sasrec_blocks_and_logits(
        params, seqs_cf, pos_embs, neg_embs)

    # TODO(synk): np.unique has data-dependent output size; kept as host glue.
    unique_items = np.unique(log_seqs)
    u = jnp.asarray(unique_items, jnp.int32)
    U = int(unique_items.shape[0])
    cf_view = params['item_emb'][u]

    if view == 0:
        llm_view = llm_project(params['llm_emb'][u],
                               params['llm_w'], params['llm_b'])
        return pos_logits, neg_logits, cf_view, llm_view

    # ---- llm view: ONE batched llm_proj call for seq/pos/neg/unique rows ----
    llm_rows = jnp.concatenate([
        params['llm_emb'][ids_log].reshape(B * L, LLM_DIM),
        params['llm_emb'][ids_pos].reshape(B * L, LLM_DIM),
        params['llm_emb'][ids_neg].reshape(B * L, LLM_DIM),
        params['llm_emb'][u],
    ], axis=0)
    proj = llm_project(llm_rows, params['llm_w'], params['llm_b'])
    seqs_llm = proj[0:B * L].reshape(B, L, HIDDEN) * math.sqrt(HIDDEN) + pos_emb
    pos_llm = proj[B * L:2 * B * L].reshape(B, L, HIDDEN)
    neg_llm = proj[2 * B * L:3 * B * L].reshape(B, L, HIDDEN)
    llm_view = proj[3 * B * L:3 * B * L + U]

    pos_l_llm, neg_l_llm = sasrec_blocks_and_logits(
        params, seqs_llm, pos_llm, neg_llm)
    final_pos = pos_logits + LLM_WEIGHT * pos_l_llm
    final_neg = neg_logits + LLM_WEIGHT * neg_l_llm
    return final_pos, final_neg, cf_view, llm_view


# ---- deterministic parameter construction (packed block weights) -------------
def make_params(key):
    ks = iter(jax.random.split(key, 5 + NUM_BLOCKS * 6))

    def rnd(shape, scale=0.05):
        return (scale * jax.random.normal(next(ks), shape)).astype(jnp.float32)

    H = HIDDEN
    item_emb = rnd((ITEM_NUM + 1, H), 0.2).at[0].set(0.0)   # padding_idx=0
    pos_emb = rnd((MAXLEN + 1, H), 0.2).at[0].set(0.0)      # padding_idx=0
    llm_emb = rnd((ITEM_NUM + 1, LLM_DIM), 0.5)
    llm_w = rnd((H, LLM_DIM))
    llm_b = rnd((1, H))

    ones = jnp.ones((H,), jnp.float32)
    zeros = jnp.zeros((H,), jnp.float32)
    blk_w, blk_v = [], []
    for _ in range(NUM_BLOCKS):
        inw = rnd((3 * H, H))            # [Wq; Wk; Wv]
        ow = rnd((H, H))                 # out_proj
        w1 = rnd((H, H))                 # ffn conv1 (out, in)
        w2 = rnd((H, H))                 # ffn conv2
        b1 = rnd((H,))
        b2 = rnd((H,))
        blk_w.append(jnp.concatenate([inw, ow, w1, w2], axis=0))   # (6H, H)
        blk_v.append(jnp.stack([zeros, zeros, zeros, zeros,        # bq,bk,bv,bo
                                ones, zeros, ones, zeros,          # aLN, fLN
                                b1, b2], axis=0))                  # (10, H)

    return dict(
        item_emb=item_emb, pos_emb=pos_emb, llm_emb=llm_emb,
        llm_w=llm_w, llm_b=llm_b,
        blk_w=jnp.stack(blk_w),          # (NUM_BLOCKS, 6H, H)
        blk_v=jnp.stack(blk_v),          # (NUM_BLOCKS, 10, H)
        last_ln=jnp.stack([ones, zeros]),  # (2, H): [weight; bias]
    )


if __name__ == "__main__":
    key = jax.random.PRNGKey(0)
    kp, kseq, kpos, kneg = jax.random.split(key, 4)
    params = make_params(kp)

    B, L = 2, MAXLEN
    # np.array(...) makes a writable host copy (jax arrays export read-only buffers).
    log_seqs = np.array(jax.random.randint(kseq, (B, L), 0, ITEM_NUM + 1),
                        dtype=np.int64)
    log_seqs[:, :2] = 0  # leading padding, exercises poss *= (log_seqs != 0)
    pos_seqs = np.array(jax.random.randint(kpos, (B, L), 1, ITEM_NUM + 1),
                        dtype=np.int64)
    neg_seqs = np.array(jax.random.randint(kneg, (B, L), 1, ITEM_NUM + 1),
                        dtype=np.int64)
    user_ids = np.arange(B)

    out = sasrec_forward(params, user_ids, log_seqs, pos_seqs, neg_seqs, view=1)
    out = jax.block_until_ready(out)
    final_pos, final_neg, cf_view, llm_view = out
    assert final_pos.shape == (B, L) and final_neg.shape == (B, L)
    assert cf_view.shape[1] == HIDDEN and llm_view.shape[1] == HIDDEN
    assert all(bool(jnp.all(jnp.isfinite(o))) for o in out)
    print("KERNEL_OK")
</pallas_src>

<mosaic_0001>
module attributes {stable_mosaic.version = 11 : i64} {
  func.func @_sasrec_kernel(%arg0: i32, %arg1: memref<2x8x32xf32, #tpu.memory_space<vmem>>, %arg2: memref<2x8x32xf32, #tpu.memory_space<vmem>>, %arg3: memref<2x8x32xf32, #tpu.memory_space<vmem>>, %arg4: memref<2x192x32xf32, #tpu.memory_space<vmem>>, %arg5: memref<2x10x32xf32, #tpu.memory_space<vmem>>, %arg6: memref<2x32xf32, #tpu.memory_space<vmem>>, %arg7: memref<2x128xf32, #tpu.memory_space<vmem>>) attributes {dimension_semantics = [#tpu.dimension_semantics<parallel>], iteration_bounds = array<i64: 1>, scalar_prefetch = 0 : i64, scratch_operands = 0 : i64, tpu.core_type = #tpu.core_type<tc>, window_params = [{transform_indices = @transform_0, window_bounds = array<i64: 2, 8, 32>}, {transform_indices = @transform_1, window_bounds = array<i64: 2, 8, 32>}, {transform_indices = @transform_2, window_bounds = array<i64: 2, 8, 32>}, {pipeline_mode = #tpu.pipeline_mode<synchronous>, transform_indices = @transform_3, window_bounds = array<i64: 2, 192, 32>}, {pipeline_mode = #tpu.pipeline_mode<synchronous>, transform_indices = @transform_4, window_bounds = array<i64: 2, 10, 32>}, {pipeline_mode = #tpu.pipeline_mode<synchronous>, transform_indices = @transform_5, window_bounds = array<i64: 2, 32>}, {transform_indices = @transform_6, window_bounds = array<i64: 2, 128>}]} {
    %c0 = arith.constant 0 : index
    %c0_0 = arith.constant 0 : index
    %c0_1 = arith.constant 0 : index
    %0 = vector.load %arg1[%c0, %c0_0, %c0_1] : memref<2x8x32xf32, #tpu.memory_space<vmem>>, vector<2x8x32xf32>
    %1 = vector.shape_cast %0 : vector<2x8x32xf32> to vector<16x32xf32>
    %2 = tpu.iota {dimensions = array<i32: 0>} : vector<8x8xi32>
    %3 = tpu.iota {dimensions = array<i32: 1>} : vector<8x8xi32>
    %4 = arith.cmpi sle, %3, %2 : vector<8x8xi32>
    %5 = vector.shape_cast %4 : vector<8x8xi1> to vector<1x8x8xi1>
    %c0_2 = arith.constant 0 : index
    %c0_3 = arith.constant 0 : index
    %c0_4 = arith.constant 0 : index
    %6 = vector.load %arg4[%c0_2, %c0_3, %c0_4] : memref<2x192x32xf32, #tpu.memory_space<vmem>>, vector<1x192x32xf32>
    %7 = vector.shape_cast %6 : vector<1x192x32xf32> to vector<192x32xf32>
    %c0_5 = arith.constant 0 : index
    %c0_6 = arith.constant 0 : index
    %c0_7 = arith.constant 0 : index
    %8 = vector.load %arg5[%c0_5, %c0_6, %c0_7] : memref<2x10x32xf32, #tpu.memory_space<vmem>>, vector<1x10x32xf32>
    %9 = vector.shape_cast %8 : vector<1x10x32xf32> to vector<10x32xf32>
    %10 = vector.extract_strided_slice %9 {offsets = [4, 0], sizes = [1, 32], strides = [1, 1]} : vector<10x32xf32> to vector<1x32xf32>
    %11 = vector.extract_strided_slice %9 {offsets = [5, 0], sizes = [1, 32], strides = [1, 1]} : vector<10x32xf32> to vector<1x32xf32>
    %12 = vector.extract_strided_slice %9 {offsets = [6, 0], sizes = [1, 32], strides = [1, 1]} : vector<10x32xf32> to vector<1x32xf32>
    %13 = vector.extract_strided_slice %9 {offsets = [7, 0], sizes = [1, 32], strides = [1, 1]} : vector<10x32xf32> to vector<1x32xf32>
    %14 = vector.extract_strided_slice %7 {offsets = [0, 0], sizes = [32, 32], strides = [1, 1]} : vector<192x32xf32> to vector<32x32xf32>
    %cst = arith.constant dense<0.000000e+00> : vector<16x32xf32>
    %15 = tpu.matmul %1, %14, %cst {dimension_numbers = #tpu.dot_dimension_numbers<[1], [1], [0], [0], [0, 0, 1, 0], [], []>} : vector<16x32xf32>, vector<32x32xf32>, vector<16x32xf32> -> vector<16x32xf32>
    %16 = vector.extract_strided_slice %9 {offsets = [0, 0], sizes = [1, 32], strides = [1, 1]} : vector<10x32xf32> to vector<1x32xf32>
    %17 = vector.broadcast %16 : vector<1x32xf32> to vector<16x32xf32>
    %18 = arith.addf %15, %17 : vector<16x32xf32>
    %19 = vector.extract_strided_slice %7 {offsets = [32, 0], sizes = [32, 32], strides = [1, 1]} : vector<192x32xf32> to vector<32x32xf32>
    %cst_8 = arith.constant dense<0.000000e+00> : vector<16x32xf32>
    %20 = tpu.matmul %1, %19, %cst_8 {dimension_numbers = #tpu.dot_dimension_numbers<[1], [1], [0], [0], [0, 0, 1, 0], [], []>} : vector<16x32xf32>, vector<32x32xf32>, vector<16x32xf32> -> vector<16x32xf32>
    %21 = vector.extract_strided_slice %9 {offsets = [1, 0], sizes = [1, 32], strides = [1, 1]} : vector<10x32xf32> to vector<1x32xf32>
    %22 = vector.broadcast %21 : vector<1x32xf32> to vector<16x32xf32>
    %23 = arith.addf %20, %22 : vector<16x32xf32>
    %24 = vector.extract_strided_slice %7 {offsets = [64, 0], sizes = [32, 32], strides = [1, 1]} : vector<192x32xf32> to vector<32x32xf32>
    %cst_9 = arith.constant dense<0.000000e+00> : vector<16x32xf32>
    %25 = tpu.matmul %1, %24, %cst_9 {dimension_numbers = #tpu.dot_dimension_numbers<[1], [1], [0], [0], [0, 0, 1, 0], [], []>} : vector<16x32xf32>, vector<32x32xf32>, vector<16x32xf32> -> vector<16x32xf32>
    %26 = vector.extract_strided_slice %9 {offsets = [2, 0], sizes = [1, 32], strides = [1, 1]} : vector<10x32xf32> to vector<1x32xf32>
    %27 = vector.broadcast %26 : vector<1x32xf32> to vector<16x32xf32>
    %28 = arith.addf %25, %27 : vector<16x32xf32>
    %29 = vector.shape_cast %18 : vector<16x32xf32> to vector<2x8x32xf32>
    %30 = vector.extract_strided_slice %29 {offsets = [0, 0, 0], sizes = [2, 8, 16], strides = [1, 1, 1]} : vector<2x8x32xf32> to vector<2x8x16xf32>
    %31 = vector.extract_strided_slice %29 {offsets = [0, 0, 16], sizes = [2, 8, 16], strides = [1, 1, 1]} : vector<2x8x32xf32> to vector<2x8x16xf32>
    %32 = tpu.concatenate %30, %31 in 0 : vector<2x8x16xf32>, vector<2x8x16xf32> -> vector<4x8x16xf32>
    %33 = vector.shape_cast %23 : vector<16x32xf32> to vector<2x8x32xf32>
    %34 = vector.extract_strided_slice %33 {offsets = [0, 0, 0], sizes = [2, 8, 16], strides = [1, 1, 1]} : vector<2x8x32xf32> to vector<2x8x16xf32>
    %35 = vector.extract_strided_slice %33 {offsets = [0, 0, 16], sizes = [2, 8, 16], strides = [1, 1, 1]} : vector<2x8x32xf32> to vector<2x8x16xf32>
    %36 = tpu.concatenate %34, %35 in 0 : vector<2x8x16xf32>, vector<2x8x16xf32> -> vector<4x8x16xf32>
    %37 = vector.shape_cast %28 : vector<16x32xf32> to vector<2x8x32xf32>
    %38 = vector.extract_strided_slice %37 {offsets = [0, 0, 0], sizes = [2, 8, 16], strides = [1, 1, 1]} : vector<2x8x32xf32> to vector<2x8x16xf32>
    %39 = vector.extract_strided_slice %37 {offsets = [0, 0, 16], sizes = [2, 8, 16], strides = [1, 1, 1]} : vector<2x8x32xf32> to vector<2x8x16xf32>
    %40 = tpu.concatenate %38, %39 in 0 : vector<2x8x16xf32>, vector<2x8x16xf32> -> vector<4x8x16xf32>
    "tpu.trace_start"() <{level = 10 : i32, message = "bqd,bkd->bqk"}> : () -> ()
    %cst_10 = arith.constant dense<0.000000e+00> : vector<4x8x8xf32>
    %41 = tpu.matmul %32, %36, %cst_10 {dimension_numbers = #tpu.dot_dimension_numbers<[2], [2], [1], [1], [0, 0, 0, 1, 1, 1], [0], [0]>} : vector<4x8x16xf32>, vector<4x8x16xf32>, vector<4x8x8xf32> -> vector<4x8x8xf32>
    "tpu.trace_stop"() : () -> ()
    %cst_11 = arith.constant 2.500000e-01 : f32
    %42 = vector.broadcast %cst_11 : f32 to vector<4x8x8xf32>
    %43 = arith.mulf %41, %42 : vector<4x8x8xf32>
    %cst_12 = arith.constant -1.000000e+30 : f32
    %44 = vector.shape_cast %5 : vector<1x8x8xi1> to vector<1x8x8xi1>
    %45 = vector.broadcast %44 : vector<1x8x8xi1> to vector<4x8x8xi1>
    %46 = vector.broadcast %cst_12 : f32 to vector<4x8x8xf32>
    %47 = arith.select %45, %43, %46 : vector<4x8x8xi1>, vector<4x8x8xf32>
    %cst_13 = arith.constant dense<0xFF800000> : vector<4x8xf32>
    %48 = vector.multi_reduction <maximumf>, %47, %cst_13 [2] : vector<4x8x8xf32> to vector<4x8xf32>
    %49 = vector.shape_cast %48 : vector<4x8xf32> to vector<4x8x1xf32>
    %50 = vector.broadcast %49 : vector<4x8x1xf32> to vector<4x8x8xf32>
    %51 = arith.subf %47, %50 : vector<4x8x8xf32>
    %52 = math.exp %51 : vector<4x8x8xf32>
    %cst_14 = arith.constant dense<0.000000e+00> : vector<4x8xf32>
    %53 = vector.multi_reduction <add>, %52, %cst_14 [2] : vector<4x8x8xf32> to vector<4x8xf32>
    %54 = vector.shape_cast %53 : vector<4x8xf32> to vector<4x8x1xf32>
    %55 = tpu.reciprocal %54 {approx = true} : vector<4x8x1xf32> -> vector<4x8x1xf32>
    %56 = vector.broadcast %55 : vector<4x8x1xf32> to vector<4x8x8xf32>
    %57 = arith.mulf %52, %56 : vector<4x8x8xf32>
    "tpu.trace_start"() <{level = 10 : i32, message = "bqk,bkd->bqd"}> : () -> ()
    %cst_15 = arith.constant dense<0.000000e+00> : vector<4x8x16xf32>
    %58 = tpu.matmul %57, %40, %cst_15 {dimension_numbers = #tpu.dot_dimension_numbers<[2], [1], [1], [2], [0, 0, 0, 1, 1, 2], [0], [0]>} : vector<4x8x8xf32>, vector<4x8x16xf32>, vector<4x8x16xf32> -> vector<4x8x16xf32>
    "tpu.trace_stop"() : () -> ()
    %59 = vector.extract_strided_slice %58 {offsets = [0, 0, 0], sizes = [2, 8, 16], strides = [1, 1, 1]} : vector<4x8x16xf32> to vector<2x8x16xf32>
    %60 = vector.extract_strided_slice %58 {offsets = [2, 0, 0], sizes = [2, 8, 16], strides = [1, 1, 1]} : vector<4x8x16xf32> to vector<2x8x16xf32>
    %61 = tpu.concatenate %59, %60 in 2 : vector<2x8x16xf32>, vector<2x8x16xf32> -> vector<2x8x32xf32>
    %62 = vector.shape_cast %61 : vector<2x8x32xf32> to vector<16x32xf32>
    %63 = vector.extract_strided_slice %7 {offsets = [96, 0], sizes = [32, 32], strides = [1, 1]} : vector<192x32xf32> to vector<32x32xf32>
    %cst_16 = arith.constant dense<0.000000e+00> : vector<16x32xf32>
    %64 = tpu.matmul %62, %63, %cst_16 {dimension_numbers = #tpu.dot_dimension_numbers<[1], [1], [0], [0], [0, 0, 1, 0], [], []>} : vector<16x32xf32>, vector<32x32xf32>, vector<16x32xf32> -> vector<16x32xf32>
    %65 = vector.extract_strided_slice %9 {offsets = [3, 0], sizes = [1, 32], strides = [1, 1]} : vector<10x32xf32> to vector<1x32xf32>
    %66 = vector.broadcast %65 : vector<1x32xf32> to vector<16x32xf32>
    %67 = arith.addf %64, %66 : vector<16x32xf32>
    %68 = arith.addf %1, %67 : vector<16x32xf32>
    %cst_17 = arith.constant dense<0.000000e+00> : vector<16xf32>
    %69 = vector.multi_reduction <add>, %68, %cst_17 [1] : vector<16x32xf32> to vector<16xf32>
    %70 = vector.shape_cast %69 : vector<16xf32> to vector<16x1xf32>
    %cst_18 = arith.constant 3.200000e+01 : f32
    %71 = vector.broadcast %cst_18 : f32 to vector<16x1xf32>
    %72 = arith.divf %70, %71 : vector<16x1xf32>
    %73 = vector.broadcast %72 : vector<16x1xf32> to vector<16x32xf32>
    %74 = arith.subf %68, %73 : vector<16x32xf32>
    %75 = arith.mulf %74, %74 : vector<16x32xf32>
    %cst_19 = arith.constant dense<0.000000e+00> : vector<16xf32>
    %76 = vector.multi_reduction <add>, %75, %cst_19 [1] : vector<16x32xf32> to vector<16xf32>
    %77 = vector.shape_cast %76 : vector<16xf32> to vector<16x1xf32>
    %cst_20 = arith.constant 3.200000e+01 : f32
    %78 = vector.broadcast %cst_20 : f32 to vector<16x1xf32>
    %79 = arith.divf %77, %78 : vector<16x1xf32>
    %80 = vector.broadcast %72 : vector<16x1xf32> to vector<16x32xf32>
    %81 = arith.subf %68, %80 : vector<16x32xf32>
    %cst_21 = arith.constant 9.99999993E-9 : f32
    %82 = vector.broadcast %cst_21 : f32 to vector<16x1xf32>
    %83 = arith.addf %79, %82 : vector<16x1xf32>
    %84 = math.rsqrt %83 : vector<16x1xf32>
    %85 = vector.broadcast %84 : vector<16x1xf32> to vector<16x32xf32>
    %86 = arith.mulf %81, %85 : vector<16x32xf32>
    %87 = vector.broadcast %10 : vector<1x32xf32> to vector<16x32xf32>
    %88 = arith.mulf %86, %87 : vector<16x32xf32>
    %89 = vector.broadcast %11 : vector<1x32xf32> to vector<16x32xf32>
    %90 = arith.addf %88, %89 : vector<16x32xf32>
    %91 = vector.extract_strided_slice %7 {offsets = [128, 0], sizes = [32, 32], strides = [1, 1]} : vector<192x32xf32> to vector<32x32xf32>
    %cst_22 = arith.constant dense<0.000000e+00> : vector<16x32xf32>
    %92 = tpu.matmul %90, %91, %cst_22 {dimension_numbers = #tpu.dot_dimension_numbers<[1], [1], [0], [0], [0, 0, 1, 0], [], []>} : vector<16x32xf32>, vector<32x32xf32>, vector<16x32xf32> -> vector<16x32xf32>
    %93 = vector.extract_strided_slice %9 {offsets = [8, 0], sizes = [1, 32], strides = [1, 1]} : vector<10x32xf32> to vector<1x32xf32>
    %94 = vector.broadcast %93 : vector<1x32xf32> to vector<16x32xf32>
    %95 = arith.addf %92, %94 : vector<16x32xf32>
    %cst_23 = arith.constant 0.000000e+00 : f32
    %96 = vector.broadcast %cst_23 : f32 to vector<16x32xf32>
    %97 = arith.maximumf %95, %96 : vector<16x32xf32>
    %98 = vector.extract_strided_slice %7 {offsets = [160, 0], sizes = [32, 32], strides = [1, 1]} : vector<192x32xf32> to vector<32x32xf32>
    %cst_24 = arith.constant dense<0.000000e+00> : vector<16x32xf32>
    %99 = tpu.matmul %97, %98, %cst_24 {dimension_numbers = #tpu.dot_dimension_numbers<[1], [1], [0], [0], [0, 0, 1, 0], [], []>} : vector<16x32xf32>, vector<32x32xf32>, vector<16x32xf32> -> vector<16x32xf32>
    %100 = vector.extract_strided_slice %9 {offsets = [9, 0], sizes = [1, 32], strides = [1, 1]} : vector<10x32xf32> to vector<1x32xf32>
    %101 = vector.broadcast %100 : vector<1x32xf32> to vector<16x32xf32>
    %102 = arith.addf %99, %101 : vector<16x32xf32>
    %103 = arith.addf %90, %102 : vector<16x32xf32>
    %cst_25 = arith.constant dense<0.000000e+00> : vector<16xf32>
    %104 = vector.multi_reduction <add>, %103, %cst_25 [1] : vector<16x32xf32> to vector<16xf32>
    %105 = vector.shape_cast %104 : vector<16xf32> to vector<16x1xf32>
    %cst_26 = arith.constant 3.200000e+01 : f32
    %106 = vector.broadcast %cst_26 : f32 to vector<16x1xf32>
    %107 = arith.divf %105, %106 : vector<16x1xf32>
    %108 = vector.broadcast %107 : vector<16x1xf32> to vector<16x32xf32>
    %109 = arith.subf %103, %108 : vector<16x32xf32>
    %110 = arith.mulf %109, %109 : vector<16x32xf32>
    %cst_27 = arith.constant dense<0.000000e+00> : vector<16xf32>
    %111 = vector.multi_reduction <add>, %110, %cst_27 [1] : vector<16x32xf32> to vector<16xf32>
    %112 = vector.shape_cast %111 : vector<16xf32> to vector<16x1xf32>
    %cst_28 = arith.constant 3.200000e+01 : f32
    %113 = vector.broadcast %cst_28 : f32 to vector<16x1xf32>
    %114 = arith.divf %112, %113 : vector<16x1xf32>
    %115 = vector.broadcast %107 : vector<16x1xf32> to vector<16x32xf32>
    %116 = arith.subf %103, %115 : vector<16x32xf32>
    %cst_29 = arith.constant 9.99999993E-9 : f32
    %117 = vector.broadcast %cst_29 : f32 to vector<16x1xf32>
    %118 = arith.addf %114, %117 : vector<16x1xf32>
    %119 = math.rsqrt %118 : vector<16x1xf32>
    %120 = vector.broadcast %119 : vector<16x1xf32> to vector<16x32xf32>
    %121 = arith.mulf %116, %120 : vector<16x32xf32>
    %122 = vector.broadcast %12 : vector<1x32xf32> to vector<16x32xf32>
    %123 = arith.mulf %121, %122 : vector<16x32xf32>
    %124 = vector.broadcast %13 : vector<1x32xf32> to vector<16x32xf32>
    %125 = arith.addf %123, %124 : vector<16x32xf32>
    %c1 = arith.constant 1 : index
    %c0_30 = arith.constant 0 : index
    %c0_31 = arith.constant 0 : index
    %126 = vector.load %arg4[%c1, %c0_30, %c0_31] : memref<2x192x32xf32, #tpu.memory_space<vmem>>, vector<1x192x32xf32>
    %127 = vector.shape_cast %126 : vector<1x192x32xf32> to vector<192x32xf32>
    %c1_32 = arith.constant 1 : index
    %c0_33 = arith.constant 0 : index
    %c0_34 = arith.constant 0 : index
    %128 = vector.load %arg5[%c1_32, %c0_33, %c0_34] : memref<2x10x32xf32, #tpu.memory_space<vmem>>, vector<1x10x32xf32>
    %129 = vector.shape_cast %128 : vector<1x10x32xf32> to vector<10x32xf32>
    %130 = vector.extract_strided_slice %129 {offsets = [4, 0], sizes = [1, 32], strides = [1, 1]} : vector<10x32xf32> to vector<1x32xf32>
    %131 = vector.extract_strided_slice %129 {offsets = [5, 0], sizes = [1, 32], strides = [1, 1]} : vector<10x32xf32> to vector<1x32xf32>
    %132 = vector.extract_strided_slice %129 {offsets = [6, 0], sizes = [1, 32], strides = [1, 1]} : vector<10x32xf32> to vector<1x32xf32>
    %133 = vector.extract_strided_slice %129 {offsets = [7, 0], sizes = [1, 32], strides = [1, 1]} : vector<10x32xf32> to vector<1x32xf32>
    %134 = vector.extract_strided_slice %127 {offsets = [0, 0], sizes = [32, 32], strides = [1, 1]} : vector<192x32xf32> to vector<32x32xf32>
    %cst_35 = arith.constant dense<0.000000e+00> : vector<16x32xf32>
    %135 = tpu.matmul %125, %134, %cst_35 {dimension_numbers = #tpu.dot_dimension_numbers<[1], [1], [0], [0], [0, 0, 1, 0], [], []>} : vector<16x32xf32>, vector<32x32xf32>, vector<16x32xf32> -> vector<16x32xf32>
    %136 = vector.extract_strided_slice %129 {offsets = [0, 0], sizes = [1, 32], strides = [1, 1]} : vector<10x32xf32> to vector<1x32xf32>
    %137 = vector.broadcast %136 : vector<1x32xf32> to vector<16x32xf32>
    %138 = arith.addf %135, %137 : vector<16x32xf32>
    %139 = vector.extract_strided_slice %127 {offsets = [32, 0], sizes = [32, 32], strides = [1, 1]} : vector<192x32xf32> to vector<32x32xf32>
    %cst_36 = arith.constant dense<0.000000e+00> : vector<16x32xf32>
    %140 = tpu.matmul %125, %139, %cst_36 {dimension_numbers = #tpu.dot_dimension_numbers<[1], [1], [0], [0], [0, 0, 1, 0], [], []>} : vector<16x32xf32>, vector<32x32xf32>, vector<16x32xf32> -> vector<16x32xf32>
    %141 = vector.extract_strided_slice %129 {offsets = [1, 0], sizes = [1, 32], strides = [1, 1]} : vector<10x32xf32> to vector<1x32xf32>
    %142 = vector.broadcast %141 : vector<1x32xf32> to vector<16x32xf32>
    %143 = arith.addf %140, %142 : vector<16x32xf32>
    %144 = vector.extract_strided_slice %127 {offsets = [64, 0], sizes = [32, 32], strides = [1, 1]} : vector<192x32xf32> to vector<32x32xf32>
    %cst_37 = arith.constant dense<0.000000e+00> : vector<16x32xf32>
    %145 = tpu.matmul %125, %144, %cst_37 {dimension_numbers = #tpu.dot_dimension_numbers<[1], [1], [0], [0], [0, 0, 1, 0], [], []>} : vector<16x32xf32>, vector<32x32xf32>, vector<16x32xf32> -> vector<16x32xf32>
    %146 = vector.extract_strided_slice %129 {offsets = [2, 0], sizes = [1, 32], strides = [1, 1]} : vector<10x32xf32> to vector<1x32xf32>
    %147 = vector.broadcast %146 : vector<1x32xf32> to vector<16x32xf32>
    %148 = arith.addf %145, %147 : vector<16x32xf32>
    %149 = vector.shape_cast %138 : vector<16x32xf32> to vector<2x8x32xf32>
    %150 = vector.extract_strided_slice %149 {offsets = [0, 0, 0], sizes = [2, 8, 16], strides = [1, 1, 1]} : vector<2x8x32xf32> to vector<2x8x16xf32>
    %151 = vector.extract_strided_slice %149 {offsets = [0, 0, 16], sizes = [2, 8, 16], strides = [1, 1, 1]} : vector<2x8x32xf32> to vector<2x8x16xf32>
    %152 = tpu.concatenate %150, %151 in 0 : vector<2x8x16xf32>, vector<2x8x16xf32> -> vector<4x8x16xf32>
    %153 = vector.shape_cast %143 : vector<16x32xf32> to vector<2x8x32xf32>
    %154 = vector.extract_strided_slice %153 {offsets = [0, 0, 0], sizes = [2, 8, 16], strides = [1, 1, 1]} : vector<2x8x32xf32> to vector<2x8x16xf32>
    %155 = vector.extract_strided_slice %153 {offsets = [0, 0, 16], sizes = [2, 8, 16], strides = [1, 1, 1]} : vector<2x8x32xf32> to vector<2x8x16xf32>
    %156 = tpu.concatenate %154, %155 in 0 : vector<2x8x16xf32>, vector<2x8x16xf32> -> vector<4x8x16xf32>
    %157 = vector.shape_cast %148 : vector<16x32xf32> to vector<2x8x32xf32>
    %158 = vector.extract_strided_slice %157 {offsets = [0, 0, 0], sizes = [2, 8, 16], strides = [1, 1, 1]} : vector<2x8x32xf32> to vector<2x8x16xf32>
    %159 = vector.extract_strided_slice %157 {offsets = [0, 0, 16], sizes = [2, 8, 16], strides = [1, 1, 1]} : vector<2x8x32xf32> to vector<2x8x16xf32>
    %160 = tpu.concatenate %158, %159 in 0 : vector<2x8x16xf32>, vector<2x8x16xf32> -> vector<4x8x16xf32>
    "tpu.trace_start"() <{level = 10 : i32, message = "bqd,bkd->bqk"}> : () -> ()
    %cst_38 = arith.constant dense<0.000000e+00> : vector<4x8x8xf32>
    %161 = tpu.matmul %152, %156, %cst_38 {dimension_numbers = #tpu.dot_dimension_numbers<[2], [2], [1], [1], [0, 0, 0, 1, 1, 1], [0], [0]>} : vector<4x8x16xf32>, vector<4x8x16xf32>, vector<4x8x8xf32> -> vector<4x8x8xf32>
    "tpu.trace_stop"() : () -> ()
    %cst_39 = arith.constant 2.500000e-01 : f32
    %162 = vector.broadcast %cst_39 : f32 to vector<4x8x8xf32>
    %163 = arith.mulf %161, %162 : vector<4x8x8xf32>
    %cst_40 = arith.constant -1.000000e+30 : f32
    %164 = vector.shape_cast %5 : vector<1x8x8xi1> to vector<1x8x8xi1>
    %165 = vector.broadcast %164 : vector<1x8x8xi1> to vector<4x8x8xi1>
    %166 = vector.broadcast %cst_40 : f32 to vector<4x8x8xf32>
    %167 = arith.select %165, %163, %166 : vector<4x8x8xi1>, vector<4x8x8xf32>
    %cst_41 = arith.constant dense<0xFF800000> : vector<4x8xf32>
    %168 = vector.multi_reduction <maximumf>, %167, %cst_41 [2] : vector<4x8x8xf32> to vector<4x8xf32>
    %169 = vector.shape_cast %168 : vector<4x8xf32> to vector<4x8x1xf32>
    %170 = vector.broadcast %169 : vector<4x8x1xf32> to vector<4x8x8xf32>
    %171 = arith.subf %167, %170 : vector<4x8x8xf32>
    %172 = math.exp %171 : vector<4x8x8xf32>
    %cst_42 = arith.constant dense<0.000000e+00> : vector<4x8xf32>
    %173 = vector.multi_reduction <add>, %172, %cst_42 [2] : vector<4x8x8xf32> to vector<4x8xf32>
    %174 = vector.shape_cast %173 : vector<4x8xf32> to vector<4x8x1xf32>
    %175 = tpu.reciprocal %174 {approx = true} : vector<4x8x1xf32> -> vector<4x8x1xf32>
    %176 = vector.broadcast %175 : vector<4x8x1xf32> to vector<4x8x8xf32>
    %177 = arith.mulf %172, %176 : vector<4x8x8xf32>
    "tpu.trace_start"() <{level = 10 : i32, message = "bqk,bkd->bqd"}> : () -> ()
    %cst_43 = arith.constant dense<0.000000e+00> : vector<4x8x16xf32>
    %178 = tpu.matmul %177, %160, %cst_43 {dimension_numbers = #tpu.dot_dimension_numbers<[2], [1], [1], [2], [0, 0, 0, 1, 1, 2], [0], [0]>} : vector<4x8x8xf32>, vector<4x8x16xf32>, vector<4x8x16xf32> -> vector<4x8x16xf32>
    "tpu.trace_stop"() : () -> ()
    %179 = vector.extract_strided_slice %178 {offsets = [0, 0, 0], sizes = [2, 8, 16], strides = [1, 1, 1]} : vector<4x8x16xf32> to vector<2x8x16xf32>
    %180 = vector.extract_strided_slice %178 {offsets = [2, 0, 0], sizes = [2, 8, 16], strides = [1, 1, 1]} : vector<4x8x16xf32> to vector<2x8x16xf32>
    %181 = tpu.concatenate %179, %180 in 2 : vector<2x8x16xf32>, vector<2x8x16xf32> -> vector<2x8x32xf32>
    %182 = vector.shape_cast %181 : vector<2x8x32xf32> to vector<16x32xf32>
    %183 = vector.extract_strided_slice %127 {offsets = [96, 0], sizes = [32, 32], strides = [1, 1]} : vector<192x32xf32> to vector<32x32xf32>
    %cst_44 = arith.constant dense<0.000000e+00> : vector<16x32xf32>
    %184 = tpu.matmul %182, %183, %cst_44 {dimension_numbers = #tpu.dot_dimension_numbers<[1], [1], [0], [0], [0, 0, 1, 0], [], []>} : vector<16x32xf32>, vector<32x32xf32>, vector<16x32xf32> -> vector<16x32xf32>
    %185 = vector.extract_strided_slice %129 {offsets = [3, 0], sizes = [1, 32], strides = [1, 1]} : vector<10x32xf32> to vector<1x32xf32>
    %186 = vector.broadcast %185 : vector<1x32xf32> to vector<16x32xf32>
    %187 = arith.addf %184, %186 : vector<16x32xf32>
    %188 = arith.addf %125, %187 : vector<16x32xf32>
    %cst_45 = arith.constant dense<0.000000e+00> : vector<16xf32>
    %189 = vector.multi_reduction <add>, %188, %cst_45 [1] : vector<16x32xf32> to vector<16xf32>
    %190 = vector.shape_cast %189 : vector<16xf32> to vector<16x1xf32>
    %cst_46 = arith.constant 3.200000e+01 : f32
    %191 = vector.broadcast %cst_46 : f32 to vector<16x1xf32>
    %192 = arith.divf %190, %191 : vector<16x1xf32>
    %193 = vector.broadcast %192 : vector<16x1xf32> to vector<16x32xf32>
    %194 = arith.subf %188, %193 : vector<16x32xf32>
    %195 = arith.mulf %194, %194 : vector<16x32xf32>
    %cst_47 = arith.constant dense<0.000000e+00> : vector<16xf32>
    %196 = vector.multi_reduction <add>, %195, %cst_47 [1] : vector<16x32xf32> to vector<16xf32>
    %197 = vector.shape_cast %196 : vector<16xf32> to vector<16x1xf32>
    %cst_48 = arith.constant 3.200000e+01 : f32
    %198 = vector.broadcast %cst_48 : f32 to vector<16x1xf32>
    %199 = arith.divf %197, %198 : vector<16x1xf32>
    %200 = vector.broadcast %192 : vector<16x1xf32> to vector<16x32xf32>
    %201 = arith.subf %188, %200 : vector<16x32xf32>
    %cst_49 = arith.constant 9.99999993E-9 : f32
    %202 = vector.broadcast %cst_49 : f32 to vector<16x1xf32>
    %203 = arith.addf %199, %202 : vector<16x1xf32>
    %204 = math.rsqrt %203 : vector<16x1xf32>
    %205 = vector.broadcast %204 : vector<16x1xf32> to vector<16x32xf32>
    %206 = arith.mulf %201, %205 : vector<16x32xf32>
    %207 = vector.broadcast %130 : vector<1x32xf32> to vector<16x32xf32>
    %208 = arith.mulf %206, %207 : vector<16x32xf32>
    %209 = vector.broadcast %131 : vector<1x32xf32> to vector<16x32xf32>
    %210 = arith.addf %208, %209 : vector<16x32xf32>
    %211 = vector.extract_strided_slice %127 {offsets = [128, 0], sizes = [32, 32], strides = [1, 1]} : vector<192x32xf32> to vector<32x32xf32>
    %cst_50 = arith.constant dense<0.000000e+00> : vector<16x32xf32>
    %212 = tpu.matmul %210, %211, %cst_50 {dimension_numbers = #tpu.dot_dimension_numbers<[1], [1], [0], [0], [0, 0, 1, 0], [], []>} : vector<16x32xf32>, vector<32x32xf32>, vector<16x32xf32> -> vector<16x32xf32>
    %213 = vector.extract_strided_slice %129 {offsets = [8, 0], sizes = [1, 32], strides = [1, 1]} : vector<10x32xf32> to vector<1x32xf32>
    %214 = vector.broadcast %213 : vector<1x32xf32> to vector<16x32xf32>
    %215 = arith.addf %212, %214 : vector<16x32xf32>
    %cst_51 = arith.constant 0.000000e+00 : f32
    %216 = vector.broadcast %cst_51 : f32 to vector<16x32xf32>
    %217 = arith.maximumf %215, %216 : vector<16x32xf32>
    %218 = vector.extract_strided_slice %127 {offsets = [160, 0], sizes = [32, 32], strides = [1, 1]} : vector<192x32xf32> to vector<32x32xf32>
    %cst_52 = arith.constant dense<0.000000e+00> : vector<16x32xf32>
    %219 = tpu.matmul %217, %218, %cst_52 {dimension_numbers = #tpu.dot_dimension_numbers<[1], [1], [0], [0], [0, 0, 1, 0], [], []>} : vector<16x32xf32>, vector<32x32xf32>, vector<16x32xf32> -> vector<16x32xf32>
    %220 = vector.extract_strided_slice %129 {offsets = [9, 0], sizes = [1, 32], strides = [1, 1]} : vector<10x32xf32> to vector<1x32xf32>
    %221 = vector.broadcast %220 : vector<1x32xf32> to vector<16x32xf32>
    %222 = arith.addf %219, %221 : vector<16x32xf32>
    %223 = arith.addf %210, %222 : vector<16x32xf32>
    %cst_53 = arith.constant dense<0.000000e+00> : vector<16xf32>
    %224 = vector.multi_reduction <add>, %223, %cst_53 [1] : vector<16x32xf32> to vector<16xf32>
    %225 = vector.shape_cast %224 : vector<16xf32> to vector<16x1xf32>
    %cst_54 = arith.constant 3.200000e+01 : f32
    %226 = vector.broadcast %cst_54 : f32 to vector<16x1xf32>
    %227 = arith.divf %225, %226 : vector<16x1xf32>
    %228 = vector.broadcast %227 : vector<16x1xf32> to vector<16x32xf32>
    %229 = arith.subf %223, %228 : vector<16x32xf32>
    %230 = arith.mulf %229, %229 : vector<16x32xf32>
    %cst_55 = arith.constant dense<0.000000e+00> : vector<16xf32>
    %231 = vector.multi_reduction <add>, %230, %cst_55 [1] : vector<16x32xf32> to vector<16xf32>
    %232 = vector.shape_cast %231 : vector<16xf32> to vector<16x1xf32>
    %cst_56 = arith.constant 3.200000e+01 : f32
    %233 = vector.broadcast %cst_56 : f32 to vector<16x1xf32>
    %234 = arith.divf %232, %233 : vector<16x1xf32>
    %235 = vector.broadcast %227 : vector<16x1xf32> to vector<16x32xf32>
    %236 = arith.subf %223, %235 : vector<16x32xf32>
    %cst_57 = arith.constant 9.99999993E-9 : f32
    %237 = vector.broadcast %cst_57 : f32 to vector<16x1xf32>
    %238 = arith.addf %234, %237 : vector<16x1xf32>
    %239 = math.rsqrt %238 : vector<16x1xf32>
    %240 = vector.broadcast %239 : vector<16x1xf32> to vector<16x32xf32>
    %241 = arith.mulf %236, %240 : vector<16x32xf32>
    %242 = vector.broadcast %132 : vector<1x32xf32> to vector<16x32xf32>
    %243 = arith.mulf %241, %242 : vector<16x32xf32>
    %244 = vector.broadcast %133 : vector<1x32xf32> to vector<16x32xf32>
    %245 = arith.addf %243, %244 : vector<16x32xf32>
    %c0_58 = arith.constant 0 : index
    %c0_59 = arith.constant 0 : index
    %246 = vector.load %arg6[%c0_58, %c0_59] : memref<2x32xf32, #tpu.memory_space<vmem>>, vector<2x32xf32>
    %247 = vector.extract_strided_slice %246 {offsets = [0, 0], sizes = [1, 32], strides = [1, 1]} : vector<2x32xf32> to vector<1x32xf32>
    %248 = vector.extract_strided_slice %246 {offsets = [1, 0], sizes = [1, 32], strides = [1, 1]} : vector<2x32xf32> to vector<1x32xf32>
    %cst_60 = arith.constant dense<0.000000e+00> : vector<16xf32>
    %249 = vector.multi_reduction <add>, %245, %cst_60 [1] : vector<16x32xf32> to vector<16xf32>
    %250 = vector.shape_cast %249 : vector<16xf32> to vector<16x1xf32>
    %cst_61 = arith.constant 3.200000e+01 : f32
    %251 = vector.broadcast %cst_61 : f32 to vector<16x1xf32>
    %252 = arith.divf %250, %251 : vector<16x1xf32>
    %253 = vector.broadcast %252 : vector<16x1xf32> to vector<16x32xf32>
    %254 = arith.subf %245, %253 : vector<16x32xf32>
    %255 = arith.mulf %254, %254 : vector<16x32xf32>
    %cst_62 = arith.constant dense<0.000000e+00> : vector<16xf32>
    %256 = vector.multi_reduction <add>, %255, %cst_62 [1] : vector<16x32xf32> to vector<16xf32>
    %257 = vector.shape_cast %256 : vector<16xf32> to vector<16x1xf32>
    %cst_63 = arith.constant 3.200000e+01 : f32
    %258 = vector.broadcast %cst_63 : f32 to vector<16x1xf32>
    %259 = arith.divf %257, %258 : vector<16x1xf32>
    %260 = vector.broadcast %252 : vector<16x1xf32> to vector<16x32xf32>
    %261 = arith.subf %245, %260 : vector<16x32xf32>
    %cst_64 = arith.constant 9.99999993E-9 : f32
    %262 = vector.broadcast %cst_64 : f32 to vector<16x1xf32>
    %263 = arith.addf %259, %262 : vector<16x1xf32>
    %264 = math.rsqrt %263 : vector<16x1xf32>
    %265 = vector.broadcast %264 : vector<16x1xf32> to vector<16x32xf32>
    %266 = arith.mulf %261, %265 : vector<16x32xf32>
    %267 = vector.broadcast %247 : vector<1x32xf32> to vector<16x32xf32>
    %268 = arith.mulf %266, %267 : vector<16x32xf32>
    %269 = vector.broadcast %248 : vector<1x32xf32> to vector<16x32xf32>
    %270 = arith.addf %268, %269 : vector<16x32xf32>
    %271 = vector.shape_cast %270 : vector<16x32xf32> to vector<2x8x32xf32>
    %c0_65 = arith.constant 0 : index
    %c0_66 = arith.constant 0 : index
    %c0_67 = arith.constant 0 : index
    %272 = vector.load %arg2[%c0_65, %c0_66, %c0_67] : memref<2x8x32xf32, #tpu.memory_space<vmem>>, vector<2x8x32xf32>
    %273 = arith.mulf %271, %272 : vector<2x8x32xf32>
    %cst_68 = arith.constant dense<0.000000e+00> : vector<2x8xf32>
    %274 = vector.multi_reduction <add>, %273, %cst_68 [2] : vector<2x8x32xf32> to vector<2x8xf32>
    %c0_69 = arith.constant 0 : index
    %c0_70 = arith.constant 0 : index
    %c0_71 = arith.constant 0 : index
    %275 = vector.load %arg3[%c0_69, %c0_70, %c0_71] : memref<2x8x32xf32, #tpu.memory_space<vmem>>, vector<2x8x32xf32>
    %276 = arith.mulf %271, %275 : vector<2x8x32xf32>
    %cst_72 = arith.constant dense<0.000000e+00> : vector<2x8xf32>
    %277 = vector.multi_reduction <add>, %276, %cst_72 [2] : vector<2x8x32xf32> to vector<2x8xf32>
    %cst_73 = arith.constant 0.000000e+00 : f32
    %278 = vector.broadcast %cst_73 : f32 to vector<2x112xf32>
    %279 = tpu.concatenate %274, %277, %278 in 1 : vector<2x8xf32>, vector<2x8xf32>, vector<2x112xf32> -> vector<2x128xf32>
    %c0_74 = arith.constant 0 : index
    %c0_75 = arith.constant 0 : index
    %280 = vector.load %arg7[%c0_74, %c0_75] : memref<2x128xf32, #tpu.memory_space<vmem>>, vector<2x128xf32>
    tpu.vector_store %arg7[%c0_74, %c0_75], %279 {strides = array<i32>} : memref<2x128xf32, #tpu.memory_space<vmem>>, vector<2x128xf32>,
    return
  }
  func.func @transform_0(%arg0: i32) -> (i32, i32, i32) {
    %c0_i32 = arith.constant 0 : i32
    %c0_i32_0 = arith.constant 0 : i32
    %c0_i32_1 = arith.constant 0 : i32
    return %arg0, %c0_i32, %c0_i32_0 : i32, i32, i32
  }
  func.func @transform_1(%arg0: i32) -> (i32, i32, i32) {
    %c0_i32 = arith.constant 0 : i32
    %c0_i32_0 = arith.constant 0 : i32
    %c0_i32_1 = arith.constant 0 : i32
    return %arg0, %c0_i32, %c0_i32_0 : i32, i32, i32
  }
  func.func @transform_2(%arg0: i32) -> (i32, i32, i32) {
    %c0_i32 = arith.constant 0 : i32
    %c0_i32_0 = arith.constant 0 : i32
    %c0_i32_1 = arith.constant 0 : i32
    return %arg0, %c0_i32, %c0_i32_0 : i32, i32, i32
  }
  func.func @transform_3(%arg0: i32) -> (i32, i32, i32) {
    %c0_i32 = arith.constant 0 : i32
    %c0_i32_0 = arith.constant 0 : i32
    %c0_i32_1 = arith.constant 0 : i32
    %c0_i32_2 = arith.constant 0 : i32
    return %c0_i32, %c0_i32_0, %c0_i32_1 : i32, i32, i32
  }
  func.func @transform_4(%arg0: i32) -> (i32, i32, i32) {
    %c0_i32 = arith.constant 0 : i32
    %c0_i32_0 = arith.constant 0 : i32
    %c0_i32_1 = arith.constant 0 : i32
    %c0_i32_2 = arith.constant 0 : i32
    return %c0_i32, %c0_i32_0, %c0_i32_1 : i32, i32, i32
  }
  func.func @transform_5(%arg0: i32) -> (i32, i32) {
    %c0_i32 = arith.constant 0 : i32
    %c0_i32_0 = arith.constant 0 : i32
    %c0_i32_1 = arith.constant 0 : i32
    return %c0_i32, %c0_i32_0 : i32, i32
  }
  func.func @transform_6(%arg0: i32) -> (i32, i32) {
    %c0_i32 = arith.constant 0 : i32
    %c0_i32_0 = arith.constant 0 : i32
    return %arg0, %c0_i32 : i32, i32
  }
}

</mosaic_0001>

<bundles_post_ra>
// kernel: tpu_custom_call.1
= control target key start
LH: loop header
LB: loop body
LE: loop exit
PB: predicated region body
PF: predicated region fallthrough
CT: control target
= control target key end

     0   :  { %vm61_vm0 = vcmask 261120   ;;  %s3952_s0 = inlined_call_operand.vmem [shape: f32[2,8,32], index: 0, kind: input, shape index: {}]   ;;  %s3953_s1 = inlined_call_operand.vmem [shape: f32[2,8,32], index: 1, kind: input, shape index: {}]   ;;  %s3954_s2 = inlined_call_operand.vmem [shape: f32[2,8,32], index: 2, kind: input, shape index: {}]   ;;  %s3955_s3 = inlined_call_operand.vmem [shape: f32[2,192,32], index: 3, kind: input, shape index: {}]   ;;  %s3956_s4 = inlined_call_operand.vmem [shape: f32[2,10,32], index: 4, kind: input, shape index: {}]   ;;  %s3957_s5 = inlined_call_operand.vmem [shape: f32[2,32], index: 5, kind: input, shape index: {}]   ;;  %s3958_s6 = inlined_call_operand.hbm [shape: f32[2,128], index: 6, kind: output, shape index: {}]  }
   0x1   :  { %v38_v0 = vld [vmem:[%s3955_s3 + $0x38] sm:$0xff]  ;;  %v37_v2 = vld [vmem:[%s3955_s3 + $0x30] sm:$0xff]  ;;  %v3413_v4 = vld [vmem:[%s3952_s0] sm:$0xff] }
   0x2   :  { %v34_v1 = vld [vmem:[%s3955_s3 + $0x18] sm:$0xff]  ;;  %3074 = vmatprep.subr.msk.mxu1 %vm61_vm0, %v38_v0  ;;  %v33_v3 = vld [vmem:[%s3955_s3 + $0x10] sm:$0xff] }
   0x3   :  { %3063 = vmatprep.subr.msk.mxu0 %vm61_vm0, %v34_v1  ;;  %3075 = vmatpush3.xpose.msk.msra.mxu1 %vm61_vm0, %v38_v0 }
   0x4   :  { %3064 = vmatpush3.xpose.msk.msra.mxu0 %vm61_vm0, %v34_v1  ;;  %3076 = vmatprep.subr.msk.mxu1 %vm61_vm0, %v37_v2 }
   0x5   :  { %3065 = vmatprep.subr.msk.mxu0 %vm61_vm0, %v33_v3 }
   0x6   :  { %11 = vsyncpa [#allocation3], 0  ;;  %v36_v5 = vld [vmem:[%s3955_s3 + $0x28] sm:$0xff]  ;;  %3082 = vmatprep.mubr.msk.f32.mxu1 %vm61_vm0, %v3413_v4  ;;  %3071 = vmatprep.mubr.msk.f32.mxu0 %vm61_vm0, %v3413_v4  ;;  %v35_v7 = vld [vmem:[%s3955_s3 + $0x20] sm:$0xff]  ;;  %v3354_v10 = vmov 0.0   ;;  %vm3355_vm1 = vmmov 0   ;;  %v26_v11 = vlaneseq }
   0x7   :  { %v32_v6 = vld [vmem:[%s3955_s3 + $0x8] sm:$0xff]  ;;  %3077 = vmatpush3.xpose.msk.msra.mxu1 %vm61_vm0, %v37_v2  ;;  %v31_v8 = vld [vmem:[%s3955_s3] sm:$0xff]  ;;  %vm357_vm2 = vcmask 130048   ;;  %s3356_s18 = smov 112   ;;  %v42_v26 = vld [vmem:[%s3955_s3 + $0x58] sm:$0xff]  ;;  %vm664_vm4 = vcmask 64512  }
   0x8   :  { %3066 = vmatpush3.xpose.msk.msra.mxu0 %vm61_vm0, %v33_v3  ;;  %3078 = vmatprep.subr.msk.mxu1 %vm61_vm0, %v36_v5  ;;  %v3446_v9 = vld [vmem:[%s3952_s0 + $0x8] sm:$0xff]  ;;  %v3457_v12 = vshrl.u32 %v26_v11, 7  ;;  %v3465_v14 = vld [vmem:[%s3956_s4] sm:$0xff]  ;;  %v41_v27 = vld [vmem:[%s3955_s3 + $0x50] sm:$0xff]  ;;  %v3520_v34 = vand.u32 127, %v26_v11  ;;  %s3357_s11 = smov 16  }
   0x9   :  { %3067 = vmatprep.subr.msk.mxu0 %vm61_vm0, %v32_v6  ;;  %v40_v28 = vld [vmem:[%s3955_s3 + $0x48] sm:$0xff]  ;;  %v39_v29 = vld [vmem:[%s3955_s3 + $0x40] sm:$0xff]  ;;  %vm2804_vm5 = vcmask 1041409  }
   0xa   :  { %v3460_v13 = vsub.s32 1, %v3457_v12  ;;  %v3468_v15 = vsub.s32 0, %v3457_v12  ;;  %vm3524_vm3 = vcmp.le.s32.totalorder %v3520_v34, %v3457_v12  ;;  %v248_v2 = vsub.s32 2, %v3457_v12 }
   0xb   :  { %3079 = vmatpush3.xpose.msk.msra.mxu1 %vm61_vm0, %v36_v5 }
   0xc   :  { %3068 = vmatpush3.xpose.msk.msra.mxu0 %vm61_vm0, %v32_v6  ;;  %3080 = vmatprep.subr.msk.mxu1 %vm61_vm0, %v35_v7  ;;  %v158_v16 = vrot.slane %v3465_v14, %v3460_v13  ;;  %v60_v17 = vrot.slane %v3465_v14, %v3468_v15  ;;  %v249_v5 = vrot.slane %v3465_v14, %v248_v2 }
   0xd   :  { %3069 = vmatprep.subr.msk.mxu0 %vm61_vm0, %v31_v8 }
   0xf   :  { %3081 = vmatpush3.xpose.msk.msra.mxu1 %vm61_vm0, %v35_v7 }
  0x10   :  { %3070 = vmatpush3.xpose.msk.msra.mxu0 %vm61_vm0, %v31_v8  ;;  %3096 = vmatprep.subr.mxu1 %v3354_v10 }
  0x11   :  { %3085 = vmatprep.subr.msk.mxu0 %vm61_vm0, %v42_v26 }
  0x12   :  { %3083 = vmatmul.mubr.msk.f32.vlgmr.msra.gmra.mxu1 %vm61_vm0, %v3446_v9 }
  0x13   :  { %3072 = vmatmul.mubr.msk.f32.vlgmr.msra.gmra.mxu0 %vm61_vm0, %v3446_v9  ;;  %3098 = vmatprep.mubr.msk.f32.mxu1 %vm3355_vm1, %v3354_v10 }
  0x14   :  { %3093 = vmatprep.mubr.msk.f32.mxu0 %vm61_vm0, %v3413_v4  ;;  %3086 = vmatpush3.xpose.msk.msra.mxu0 %vm61_vm0, %v42_v26 }
  0x15   :  { %3087 = vmatprep.subr.msk.mxu0 %vm61_vm0, %v41_v27 }
  0x18   :  { %3088 = vmatpush3.xpose.msk.msra.mxu0 %vm61_vm0, %v41_v27 }
  0x19   :  { %3089 = vmatprep.subr.msk.mxu0 %vm61_vm0, %v40_v28 }
  0x1c   :  { %3090 = vmatpush3.xpose.msk.msra.mxu0 %vm61_vm0, %v40_v28 }
  0x1d   :  { %3091 = vmatprep.subr.msk.mxu0 %vm61_vm0, %v39_v29 }
  0x20   :  { %3092 = vmatpush3.xpose.msk.msra.mxu0 %vm61_vm0, %v39_v29 }
  0x23   :  { %3094 = vmatmul.mubr.msk.f32.vlgmr.msra.gmra.mxu0 %vm61_vm0, %v3446_v9 }
  0xd2   :  { %v3084_v18 = vpop.f32.mrf.mxu1 }
  0xd3   :  { %v3073_v19 = vpop.f32.mrf.mxu0  ;;  %v243_v20 = vadd.f32 %v3084_v18, %v158_v16 }
  0xd4   :  { %v237_v21 = vpop.f32.mrf.mxu1  ;;  %v152_v23 = vadd.f32 %v3073_v19, %v60_v17 }
  0xd5   :  { %v146_v22 = vpop.f32.mrf.mxu0  ;;  %v238_v24 = vadd.f32 %v237_v21, %v158_v16  ;;  %347 = vrot.lane.b32.xlu1 %v243_v20, %s3356_s18 }
  0xd6   :  { %v147_v25 = vadd.f32 %v146_v22, %v60_v17 }
  0xd7   :  { %345 = vrot.lane.b32.xlu0 %v238_v24, %s3356_s18  ;;  %3097 = vmatpush3.xpose.msk.msra.mxu1 %vm357_vm2, %v238_v24 }
  0xd8   :  { %3101 = vmatprep.subr.mxu1 %v3354_v10 }
  0xd9   :  { %341 = vrot.lane.b32.xlu1 %v152_v23, %s3356_s18 }
  0xda   :  { %3099 = vmatmul.mubr.msk.f32.vlgmr.msra.gmra.mxu1 %vm357_vm2, %v147_v25 }
  0xdb   :  { %339 = vrot.lane.b32.xlu0 %v147_v25, %s3356_s18  ;;  %3102 = vmatpush3.xpose.msk.msra.mxu1 %vm357_vm2, %v243_v20 }
  0xdc   :  { %3103 = vmatprep.mubr.msk.f32.mxu1 %vm3355_vm1, %v3354_v10  ;;  %3106 = vmatprep.subr.mxu1 %v3354_v10 }
  0xde   :  { %3104 = vmatmul.mubr.msk.f32.vlgmr.msra.gmra.mxu1 %vm357_vm2, %v152_v23 }
  0xdf   :  { %3108 = vmatprep.mubr.msk.f32.mxu1 %vm3355_vm1, %v3354_v10 }
  0xe3   :  { %v3095_v3 = vpop.f32.mrf.mxu0 }
  0xe4   :  { %v334_v7 = vadd.f32 %v3095_v3, %v249_v5 }
  0xe5   :  { %v328_v6 = vpop.f32.mrf.mxu0 }
  0xe6   :  { %v329_v8 = vadd.f32 %v328_v6, %v249_v5 }
 0x147   :  { %v348_v31 = vpop.permute.xlu1 %347 }
 0x149   :  { %v346_v30 = vpop.permute.xlu0 %345 }
 0x14a   :  { %3107 = vmatpush3.xpose.msk.msra.mxu1 %vm357_vm2, %v346_v30 }
 0x14b   :  { %3111 = vmatprep.subr.mxu1 %v3354_v10  ;;  %v342_v33 = vpop.permute.xlu1 %341 }
 0x14d   :  { %v340_v32 = vpop.permute.xlu0 %339 }
 0x14e   :  { %3109 = vmatmul.mubr.msk.f32.vlgmr.msra.gmra.mxu1 %vm357_vm2, %v340_v32 }
 0x14f   :  { %3112 = vmatpush3.xpose.msk.msra.mxu1 %vm357_vm2, %v348_v31  ;;  %3113 = vmatprep.mubr.msk.f32.mxu1 %vm3355_vm1, %v3354_v10 }
 0x150   :  { %3116 = vmatprep.subr.mxu1 %v3354_v10 }
 0x152   :  { %3114 = vmatmul.mubr.msk.f32.vlgmr.msra.gmra.mxu1 %vm357_vm2, %v342_v33 }
 0x153   :  { %3118 = vmatprep.mubr.msk.f32.mxu1 %vm3355_vm1, %v3354_v10  ;;  %3117 = vmatpush3.msra.mxu1 %v329_v8 }
 0x154   :  { %3121 = vmatprep.subr.mxu1 %v3354_v10 }
 0x19a   :  { %v428_v35 = vpop.f32.mrf.mxu1 }
 0x19b   :  { %v654_v37 = vmul.f32 0.25, %v428_v35 }
 0x19c   :  { %v3100_v38 = vpop.f32.mrf.mxu1 }
 0x19d   :  { %v660_v39 = vsel %vm3524_vm3, %v654_v37, -1e+30 }
 0x19e   :  { %v502_v40 = vpop.f32.mrf.mxu1  ;;  %v665_v41 = vsel %vm664_vm4, %v660_v39, -inf }
 0x19f   :  { %v655_v42 = vmul.f32 0.25, %v502_v40  ;;  %666 = vmax.xlane.f32.xlu0 %v665_v41  ;;  %v46_v41 = vld [vmem:[%s3955_s3 + $0x78] sm:$0xff] }
 0x1a0   :  { %v3105_v43 = vpop.f32.mrf.mxu1  ;;  %3136 = vmatprep.subr.msk.mxu0 %vm61_vm0, %v46_v41 }
 0x1a1   :  { %v661_v44 = vsel %vm3524_vm3, %v655_v42, -1e+30  ;;  %v45_v42 = vld [vmem:[%s3955_s3 + $0x70] sm:$0xff]  ;;  %3137 = vmatpush3.xpose.msk.msra.mxu0 %vm61_vm0, %v46_v41  ;;  %v44_v43 = vld [vmem:[%s3955_s3 + $0x68] sm:$0xff] }
 0x1a2   :  { %v668_v45 = vsel %vm664_vm4, %v661_v44, -inf  ;;  %3138 = vmatprep.subr.msk.mxu0 %vm61_vm0, %v45_v42 }
 0x1a3   :  { %669 = vmax.xlane.f32.xlu1 %v668_v45 }
 0x1a5   :  { %3139 = vmatpush3.xpose.msk.msra.mxu0 %vm61_vm0, %v45_v42 }
 0x1a6   :  { %3140 = vmatprep.subr.msk.mxu0 %vm61_vm0, %v44_v43 }
 0x1a9   :  { %3141 = vmatpush3.xpose.msk.msra.mxu0 %vm61_vm0, %v44_v43 }
 0x20e   :  { %v576_v46 = vpop.f32.mrf.mxu1 }
 0x20f   :  { %v656_v47 = vmul.f32 0.25, %v576_v46 }
 0x210   :  { %v3110_v48 = vpop.f32.mrf.mxu1 }
 0x211   :  { %v662_v49 = vsel %vm3524_vm3, %v656_v47, -1e+30  ;;  %v43_v48 = vld [vmem:[%s3955_s3 + $0x60] sm:$0xff] }
 0x212   :  { %v650_v50 = vpop.f32.mrf.mxu1  ;;  %v671_v51 = vsel %vm664_vm4, %v662_v49, -inf  ;;  %3142 = vmatprep.subr.msk.mxu0 %vm61_vm0, %v43_v48 }
 0x213   :  { %v657_v52 = vmul.f32 0.25, %v650_v50  ;;  %672 = vmax.xlane.f32.xlu0 %v671_v51  ;;  %3143 = vmatpush3.xpose.msk.msra.mxu0 %vm61_vm0, %v43_v48 }
 0x214   :  { %v3115_v53 = vpop.f32.mrf.mxu1 }
 0x215   :  { %v663_v54 = vsel %vm3524_vm3, %v657_v52, -1e+30 }
 0x216   :  { %v674_v55 = vsel %vm664_vm4, %v663_v54, -inf }
 0x217   :  { %675 = vmax.xlane.f32.xlu0 %v674_v55 }
 0x228   :  { %v667_v56 = vpop.xlane.xlu0 %666 }
 0x229   :  { %v677_v57 = vsub.f32 %v660_v39, %v667_v56 }
 0x22b   :  { %v681_v58 = vmul.f32 1.442695, %v677_v57  ;;  %v1013_v57 = vsub.s32 3, %v3457_v12 }
 0x22c   :  { %v670_v59 = vpop.xlane.xlu1 %669 }
 0x22d   :  { %3280 = vpow2.f32 %v681_v58  ;;  %v678_v60 = vsub.f32 %v661_v44, %v670_v59  ;;  %v1014_v58 = vrot.slane %v3465_v14, %v1013_v57 }
 0x22f   :  { %v683_v61 = vmul.f32 1.442695, %v678_v60 }
 0x231   :  { %3282 = vpow2.f32 %v683_v61 }
 0x23a   :  { %v3281_v62 = vpop.eup %3280 }
 0x23b   :  { %v689_v63 = vsel %vm664_vm4, %v3281_v62, 0.0 }
 0x23c   :  { %690 = vadd.xlane.f32.xlu1 %v689_v63 }
 0x23e   :  { %v3283_v0 = vpop.eup %3282 }
 0x23f   :  { %v692_v1 = vsel %vm664_vm4, %v3283_v0, 0.0 }
 0x240   :  { %693 = vadd.xlane.f32.xlu0 %v692_v1 }
 0x29c   :  { %v673_v11 = vpop.xlane.xlu0 %672 }
 0x29d   :  { %v679_v16 = vsub.f32 %v662_v49, %v673_v11 }
 0x29f   :  { %v685_v17 = vmul.f32 1.442695, %v679_v16 }
 0x2a0   :  { %v676_v18 = vpop.xlane.xlu0 %675 }
 0x2a1   :  { %3284 = vpow2.f32 %v685_v17  ;;  %v680_v19 = vsub.f32 %v663_v54, %v676_v18 }
 0x2a3   :  { %v687_v20 = vmul.f32 1.442695, %v680_v19 }
 0x2a5   :  { %3286 = vpow2.f32 %v687_v20  ;;  %v49_v20 = vld [vmem:[%s3955_s3 + $0x90] sm:$0xff] }
 0x2ae   :  { %v3285_v21 = vpop.eup %3284 }
 0x2af   :  { %v695_v22 = vsel %vm664_vm4, %v3285_v21, 0.0 }
 0x2b0   :  { %696 = vadd.xlane.f32.xlu1 %v695_v22  ;;  %v47_v22 = vld [vmem:[%s3955_s3 + $0x80] sm:$0xff] }
 0x2b2   :  { %v3287_v23 = vpop.eup %3286 }
 0x2b3   :  { %v698_v24 = vsel %vm664_vm4, %v3287_v23, 0.0 }
 0x2b4   :  { %699 = vadd.xlane.f32.xlu0 %v698_v24  ;;  %v53_v24 = vld [vmem:[%s3955_s3 + $0xb0] sm:$0xff] }
 0x2c1   :  { %351 = vrot.lane.b32.xlu1 %v329_v8, %s3356_s18 }
 0x2c5   :  { %v691_v25 = vpop.xlane.xlu1 %690 }
 0x2c6   :  { %3288 = vrcp.f32 %v691_v25 }
 0x2c9   :  { %v694_v26 = vpop.xlane.xlu0 %693 }
 0x2ca   :  { %3290 = vrcp.f32 %v694_v26  ;;  %353 = vrot.lane.b32.xlu0 %v334_v7, %s3356_s18 }
 0x2d3   :  { %v3289_v27 = vpop.eup %3288 }
 0x2d4   :  { %v705_v28 = vmul.f32 %v3289_v27, %v3281_v62 }
 0x2d6   :  { %3119 = vmatmul.mubr.msk.f32.vlgmr.msra.gmra.mxu1 %vm664_vm4, %v705_v28 }
 0x2d7   :  { %v3291_v29 = vpop.eup %3290  ;;  %3122 = vmatpush3.msra.mxu1 %v334_v7  ;;  %3123 = vmatprep.mubr.msk.f32.mxu1 %vm3355_vm1, %v3354_v10 }
 0x2d8   :  { %v706_v30 = vmul.f32 %v3291_v29, %v3283_v0  ;;  %3126 = vmatprep.subr.mxu1 %v3354_v10 }
 0x2da   :  { %3124 = vmatmul.mubr.msk.f32.vlgmr.msra.gmra.mxu1 %vm664_vm4, %v706_v30 }
 0x2db   :  { %3128 = vmatprep.mubr.msk.f32.mxu1 %vm3355_vm1, %v3354_v10 }
 0x339   :  { %v697_v31 = vpop.xlane.xlu1 %696 }
 0x33a   :  { %3292 = vrcp.f32 %v697_v31  ;;  %v1139_v31 = vsub.s32 4, %v3457_v12 }
 0x33d   :  { %v700_v32 = vpop.xlane.xlu0 %699  ;;  %v352_v33 = vpop.permute.xlu1 %351 }
 0x33e   :  { %3294 = vrcp.f32 %v700_v32  ;;  %3127 = vmatpush3.msra.mxu1 %v352_v33  ;;  %v1145_v32 = vsub.s32 5, %v3457_v12  ;;  %v1140_v33 = vrot.slane %v3465_v14, %v1139_v31 }
 0x33f   :  { %3131 = vmatprep.subr.mxu1 %v3354_v10 }
 0x341   :  { %v354_v38 = vpop.permute.xlu0 %353 }
 0x347   :  { %v3293_v35 = vpop.eup %3292 }
 0x348   :  { %v707_v37 = vmul.f32 %v3293_v35, %v3285_v21  ;;  %v48_v21 = vld [vmem:[%s3955_s3 + $0x88] sm:$0xff] }
 0x34a   :  { %3129 = vmatmul.mubr.msk.f32.vlgmr.msra.gmra.mxu1 %vm664_vm4, %v707_v37 }
 0x34b   :  { %v3295_v39 = vpop.eup %3294  ;;  %3132 = vmatpush3.msra.mxu1 %v354_v38  ;;  %3133 = vmatprep.mubr.msk.f32.mxu1 %vm3355_vm1, %v3354_v10  ;;  %v1146_v38 = vrot.slane %v3465_v14, %v1145_v32 }
 0x34c   :  { %v708_v40 = vmul.f32 %v3295_v39, %v3287_v23  ;;  %v54_v23 = vld [vmem:[%s3955_s3 + $0xb8] sm:$0xff] }
 0x34d   :  { %3158 = vmatprep.subr.msk.mxu0 %vm61_vm0, %v54_v23 }
 0x34e   :  { %3134 = vmatmul.mubr.msk.f32.vlgmr.msra.gmra.mxu1 %vm664_vm4, %v708_v40 }
 0x396   :  { %v778_v44 = vpop.f32.mrf.mxu1 }
 0x398   :  { %v3120_v45 = vpop.f32.mrf.mxu1 }
 0x399   :  { %v52_v45 = vld [vmem:[%s3955_s3 + $0xa8] sm:$0xff] }
 0x39a   :  { %v851_v46 = vpop.f32.mrf.mxu1 }
 0x39c   :  { %v3125_v47 = vpop.f32.mrf.mxu1 }
 0x39d   :  { %v56_v47 = vld [vmem:[%s3956_s4 + $0x8] sm:$0x3] }
 0x39e   :  { %v1152_v48 = vrot.slane %v56_v47, %v3468_v15 }
 0x40a   :  { %v924_v49 = vpop.f32.mrf.mxu1 }
 0x40b   :  { %1003 = vrot.lane.b32.xlu1 %v924_v49, %s3357_s11 }
 0x40c   :  { %v3130_v50 = vpop.f32.mrf.mxu1 }
 0x40e   :  { %v997_v51 = vpop.f32.mrf.mxu1 }
 0x40f   :  { %1005 = vrot.lane.b32.xlu1 %v997_v51, %s3357_s11 }
 0x410   :  { %v3135_v52 = vpop.f32.mrf.mxu1 }
 0x47d   :  { %v1004_v53 = vpop.permute.xlu1 %1003 }
 0x47e   :  { %v1009_v54 = vsel %vm357_vm2, %v778_v44, %v1004_v53 }
 0x47f   :  { %3144 = vmatprep.mubr.msk.f32.mxu0 %vm61_vm0, %v1009_v54 }
 0x481   :  { %v1006_v55 = vpop.permute.xlu1 %1005 }
 0x482   :  { %v1010_v56 = vsel %vm357_vm2, %v851_v46, %v1006_v55  ;;  %v51_v46 = vld [vmem:[%s3955_s3 + $0xa0] sm:$0xff]  ;;  %v1251_v55 = vrot.slane %v56_v47, %v3460_v13 }
 0x483   :  { %3145 = vmatmul.mubr.msk.f32.vlgmr.msra.gmra.mxu0 %vm61_vm0, %v1010_v56 }
 0x484   :  { %3159 = vmatpush3.xpose.msk.msra.mxu0 %vm61_vm0, %v54_v23  ;;  %v2885_v23 = vld [vmem:[%s3955_s3 + $0xc0] sm:$0xff] }
 0x485   :  { %3160 = vmatprep.subr.msk.mxu0 %vm61_vm0, %v53_v24 }
 0x488   :  { %3161 = vmatpush3.xpose.msk.msra.mxu0 %vm61_vm0, %v53_v24  ;;  %v2889_v24 = vld [vmem:[%s3955_s3 + $0xe0] sm:$0xff] }
 0x489   :  { %3162 = vmatprep.subr.msk.mxu0 %vm61_vm0, %v52_v45 }
 0x48c   :  { %3163 = vmatpush3.xpose.msk.msra.mxu0 %vm61_vm0, %v52_v45 }
 0x48d   :  { %3164 = vmatprep.subr.msk.mxu0 %vm61_vm0, %v51_v46 }
 0x490   :  { %3165 = vmatpush3.xpose.msk.msra.mxu0 %vm61_vm0, %v51_v46 }
 0x543   :  { %v3146_v59 = vpop.f32.mrf.mxu0 }
 0x544   :  { %v1105_v60 = vadd.f32 %v3146_v59, %v1014_v58 }
 0x545   :  { %v1099_v61 = vpop.f32.mrf.mxu0 }
 0x546   :  { %v1100_v62 = vadd.f32 %v1099_v61, %v1014_v58  ;;  %v1109_v63 = vadd.f32 %v1105_v60, %v3446_v9 }
 0x548   :  { %v1113_v0 = vsel %vm61_vm0, %v1109_v63, 0.0  ;;  %v1108_v1 = vadd.f32 %v1100_v62, %v3413_v4  ;;  %v50_v4 = vld [vmem:[%s3955_s3 + $0x98] sm:$0xff] }
 0x549   :  { %1114 = vadd.xlane.f32.xlu1 %v1113_v0  ;;  %3147 = vmatprep.subr.msk.mxu1 %vm61_vm0, %v50_v4 }
 0x54a   :  { %v1110_v3 = vsel %vm61_vm0, %v1108_v1, 0.0  ;;  %3148 = vmatpush3.xpose.msk.msra.mxu1 %vm61_vm0, %v50_v4  ;;  %v2887_v4 = vld [vmem:[%s3955_s3 + $0xd0] sm:$0xff] }
 0x54b   :  { %1111 = vadd.xlane.f32.xlu0 %v1110_v3  ;;  %3149 = vmatprep.subr.msk.mxu1 %vm61_vm0, %v49_v20 }
 0x54e   :  { %3150 = vmatpush3.xpose.msk.msra.mxu1 %vm61_vm0, %v49_v20  ;;  %v2891_v20 = vld [vmem:[%s3955_s3 + $0xf0] sm:$0xff] }
 0x54f   :  { %3151 = vmatprep.subr.msk.mxu1 %vm61_vm0, %v48_v21 }
 0x552   :  { %3152 = vmatpush3.xpose.msk.msra.mxu1 %vm61_vm0, %v48_v21  ;;  %v2886_v21 = vld [vmem:[%s3955_s3 + $0xc8] sm:$0xff] }
 0x553   :  { %3153 = vmatprep.subr.msk.mxu1 %vm61_vm0, %v47_v22 }
 0x556   :  { %3154 = vmatpush3.xpose.msk.msra.mxu1 %vm61_vm0, %v47_v22  ;;  %v2890_v22 = vld [vmem:[%s3955_s3 + $0xe8] sm:$0xff] }
 0x5d2   :  { %v1115_v5 = vpop.xlane.xlu1 %1114 }
 0x5d3   :  { %v1118_v6 = vmul.f32 0.03125, %v1115_v5 }
 0x5d4   :  { %v1112_v7 = vpop.xlane.xlu0 %1111 }
 0x5d5   :  { %v1117_v8 = vmul.f32 0.03125, %v1112_v7  ;;  %v1120_v11 = vsub.f32 %v1109_v63, %v1118_v6 }
 0x5d7   :  { %v1119_v16 = vsub.f32 %v1108_v1, %v1117_v8  ;;  %v1122_v19 = vmul.f32 %v1120_v11, %v1120_v11 }
 0x5d9   :  { %v1121_v17 = vmul.f32 %v1119_v16, %v1119_v16  ;;  %v1126_v9 = vsel %vm61_vm0, %v1122_v19, 0.0  ;;  %v2888_v19 = vld [vmem:[%s3955_s3 + $0xd8] sm:$0xff] }
 0x5da   :  { %3169 = vmatprep.subr.msk.mxu1 %vm61_vm0, %v2888_v19 }
 0x5db   :  { %v1123_v18 = vsel %vm61_vm0, %v1121_v17, 0.0 }
 0x5dc   :  { %1124 = vadd.xlane.f32.xlu0 %v1123_v18 }
 0x5e0   :  { %1127 = vadd.xlane.f32.xlu0 %v1126_v9  ;;  %v2892_v9 = vld [vmem:[%s3955_s3 + $0xf8] sm:$0xff] }
 0x5e1   :  { %3180 = vmatprep.subr.msk.mxu0 %vm61_vm0, %v2892_v9 }
 0x665   :  { %v1125_v25 = vpop.xlane.xlu0 %1124 }
 0x666   :  { %v1129_v26 = vmul.f32 0.03125, %v1125_v25  ;;  %v2896_v25 = vld [vmem:[%s3955_s3 + $0x118] sm:$0xff] }
 0x668   :  { %v1131_v27 = vadd.f32 1e-08, %v1129_v26 }
 0x669   :  { %v1128_v28 = vpop.xlane.xlu0 %1127 }
 0x66a   :  { %3296 = vrsqrt.f32 %v1131_v27  ;;  %v1130_v29 = vmul.f32 0.03125, %v1128_v28 }
 0x66c   :  { %v1132_v30 = vadd.f32 1e-08, %v1130_v29 }
 0x66e   :  { %3298 = vrsqrt.f32 %v1132_v30 }
 0x677   :  { %v3297_v35 = vpop.eup %3296 }
 0x678   :  { %v1135_v37 = vmul.f32 %v3297_v35, %v1119_v16  ;;  %v1375_v35 = vsub.s32 6, %v3457_v12 }
 0x67a   :  { %v1141_v39 = vmul.f32 %v1140_v33, %v1135_v37 }
 0x67b   :  { %v3299_v40 = vpop.eup %3298 }
 0x67c   :  { %v1136_v41 = vmul.f32 %v3299_v40, %v1120_v11  ;;  %v1147_v42 = vadd.f32 %v1146_v38, %v1141_v39  ;;  %v1381_v39 = vsub.s32 7, %v3457_v12 }
 0x67e   :  { %v1142_v43 = vmul.f32 %v1140_v33, %v1136_v41  ;;  %3155 = vmatprep.mubr.msk.f32.mxu1 %vm61_vm0, %v1147_v42 }
 0x680   :  { %v1148_v44 = vadd.f32 %v1146_v38, %v1142_v43  ;;  %v1376_v38 = vrot.slane %v3465_v14, %v1375_v35 }
 0x682   :  { %3156 = vmatmul.mubr.msk.f32.vlgmr.msra.gmra.mxu1 %vm61_vm0, %v1148_v44 }
 0x683   :  { %3170 = vmatpush3.xpose.msk.msra.mxu1 %vm61_vm0, %v2888_v19 }
 0x684   :  { %3171 = vmatprep.subr.msk.mxu1 %vm61_vm0, %v2887_v4 }
 0x687   :  { %3172 = vmatpush3.xpose.msk.msra.mxu1 %vm61_vm0, %v2887_v4 }
 0x688   :  { %3173 = vmatprep.subr.msk.mxu1 %vm61_vm0, %v2886_v21 }
 0x68b   :  { %3174 = vmatpush3.xpose.msk.msra.mxu1 %vm61_vm0, %v2886_v21 }
 0x68c   :  { %3175 = vmatprep.subr.msk.mxu1 %vm61_vm0, %v2885_v23 }
 0x68f   :  { %3176 = vmatpush3.xpose.msk.msra.mxu1 %vm61_vm0, %v2885_v23 }
 0x690   :  { %3191 = vmatprep.subr.msk.mxu1 %vm61_vm0, %v2896_v25 }
 0x742   :  { %v3157_v49 = vpop.f32.mrf.mxu1 }
 0x743   :  { %v1243_v50 = vadd.f32 %v3157_v49, %v1152_v48  ;;  %v2893_v49 = vld [vmem:[%s3955_s3 + $0x100] sm:$0xff] }
 0x744   :  { %v1237_v51 = vpop.f32.mrf.mxu1 }
 0x745   :  { %v1238_v52 = vadd.f32 %v1237_v51, %v1152_v48  ;;  %v1247_v54 = vmax.f32 %v1243_v50, 0.0  ;;  %v2895_v48 = vld [vmem:[%s3955_s3 + $0x110] sm:$0xff] }
 0x746   :  { %v3753_v50 = vld [vmem:[%s3956_s4 + $0x10] sm:$0xff] }
 0x747   :  { %v1246_v53 = vmax.f32 %v1238_v52, 0.0  ;;  %v1513_v51 = vrot.slane %v3753_v50, %v3460_v13  ;;  %v1416_v52 = vrot.slane %v3753_v50, %v3468_v15 }
 0x749   :  { %3166 = vmatprep.mubr.msk.f32.mxu0 %vm61_vm0, %v1246_v53 }
 0x74a   :  { %3167 = vmatmul.mubr.msk.f32.vlgmr.msra.gmra.mxu0 %vm61_vm0, %v1247_v54 }
 0x74b   :  { %3181 = vmatpush3.xpose.msk.msra.mxu0 %vm61_vm0, %v2892_v9 }
 0x74c   :  { %3182 = vmatprep.subr.msk.mxu0 %vm61_vm0, %v2891_v20 }
 0x74f   :  { %3183 = vmatpush3.xpose.msk.msra.mxu0 %vm61_vm0, %v2891_v20 }
 0x750   :  { %3184 = vmatprep.subr.msk.mxu0 %vm61_vm0, %v2890_v22 }
 0x753   :  { %3185 = vmatpush3.xpose.msk.msra.mxu0 %vm61_vm0, %v2890_v22 }
 0x754   :  { %3186 = vmatprep.subr.msk.mxu0 %vm61_vm0, %v2889_v24 }
 0x757   :  { %3187 = vmatpush3.xpose.msk.msra.mxu0 %vm61_vm0, %v2889_v24 }
 0x758   :  { %3202 = vmatprep.subr.mxu0 %v3354_v10 }
 0x80a   :  { %v3168_v56 = vpop.f32.mrf.mxu0 }
 0x80b   :  { %v1342_v58 = vadd.f32 %v3168_v56, %v1251_v55 }
 0x80c   :  { %v1336_v59 = vpop.f32.mrf.mxu0 }
 0x80d   :  { %v1337_v60 = vadd.f32 %v1336_v59, %v1251_v55  ;;  %v1346_v61 = vadd.f32 %v1342_v58, %v1148_v44  ;;  %v1382_v44 = vrot.slane %v3465_v14, %v1381_v39  ;;  %v2894_v14 = vld [vmem:[%s3955_s3 + $0x108] sm:$0xff] }
 0x80f   :  { %v1350_v62 = vsel %vm61_vm0, %v1346_v61, 0.0  ;;  %v1345_v63 = vadd.f32 %v1337_v60, %v1147_v42 }
 0x810   :  { %1351 = vadd.xlane.f32.xlu0 %v1350_v62 }
 0x811   :  { %v1347_v0 = vsel %vm61_vm0, %v1345_v63, 0.0 }
 0x812   :  { %1348 = vadd.xlane.f32.xlu1 %v1347_v0 }
 0x899   :  { %v1352_v1 = vpop.xlane.xlu0 %1351 }
 0x89a   :  { %v1354_v3 = vmul.f32 0.03125, %v1352_v1 }
 0x89b   :  { %v1349_v5 = vpop.xlane.xlu1 %1348 }
 0x89c   :  { %v1356_v6 = vsub.f32 %v1346_v61, %v1354_v3  ;;  %v1353_v7 = vmul.f32 0.03125, %v1349_v5  ;;  %v1604_v3 = vrot.slane %v3753_v50, %v248_v2 }
 0x89e   :  { %v1355_v8 = vsub.f32 %v1345_v63, %v1353_v7  ;;  %v1358_v11 = vmul.f32 %v1356_v6, %v1356_v6 }
 0x8a0   :  { %v1362_v16 = vsel %vm61_vm0, %v1358_v11, 0.0  ;;  %v1357_v17 = vmul.f32 %v1355_v8, %v1355_v8 }
 0x8a1   :  { %1363 = vadd.xlane.f32.xlu0 %v1362_v16 }
 0x8a2   :  { %v1359_v18 = vsel %vm61_vm0, %v1357_v17, 0.0 }
 0x8a3   :  { %1360 = vadd.xlane.f32.xlu1 %v1359_v18 }
 0x92a   :  { %v1364_v26 = vpop.xlane.xlu0 %1363 }
 0x92b   :  { %v1366_v27 = vmul.f32 0.03125, %v1364_v26 }
 0x92c   :  { %v1361_v28 = vpop.xlane.xlu1 %1360 }
 0x92d   :  { %v1368_v29 = vadd.f32 1e-08, %v1366_v27  ;;  %v1365_v30 = vmul.f32 0.03125, %v1361_v28 }
 0x92f   :  { %3300 = vrsqrt.f32 %v1368_v29  ;;  %v1367_v33 = vadd.f32 1e-08, %v1365_v30 }
 0x931   :  { %3302 = vrsqrt.f32 %v1367_v33 }
 0x93c   :  { %v3301_v37 = vpop.eup %3300 }
 0x93d   :  { %v1372_v40 = vmul.f32 %v3301_v37, %v1356_v6 }
 0x93e   :  { %v3303_v41 = vpop.eup %3302 }
 0x93f   :  { %v1371_v42 = vmul.f32 %v3303_v41, %v1355_v8  ;;  %v1378_v43 = vmul.f32 %v1376_v38, %v1372_v40 }
 0x941   :  { %v1377_v45 = vmul.f32 %v1376_v38, %v1371_v42  ;;  %v3715_v47 = vadd.f32 %v1382_v44, %v1378_v43 }
 0x943   :  { %v3713_v46 = vadd.f32 %v1382_v44, %v1377_v45 }
 0x945   :  { %3177 = vmatprep.mubr.msk.f32.mxu1 %vm61_vm0, %v3713_v46  ;;  %3188 = vmatprep.mubr.msk.f32.mxu0 %vm61_vm0, %v3713_v46 }
 0x946   :  { %3178 = vmatmul.mubr.msk.f32.vlgmr.msra.gmra.mxu1 %vm61_vm0, %v3715_v47  ;;  %3189 = vmatmul.mubr.msk.f32.vlgmr.msra.gmra.mxu0 %vm61_vm0, %v3715_v47 }
 0x947   :  { %3192 = vmatpush3.xpose.msk.msra.mxu1 %vm61_vm0, %v2896_v25  ;;  %3199 = vmatprep.mubr.msk.f32.mxu1 %vm61_vm0, %v3713_v46 }
 0x948   :  { %3193 = vmatprep.subr.msk.mxu1 %vm61_vm0, %v2895_v48  ;;  %3204 = vmatprep.mubr.msk.f32.mxu0 %vm3355_vm1, %v3354_v10 }
 0x94b   :  { %3194 = vmatpush3.xpose.msk.msra.mxu1 %vm61_vm0, %v2895_v48 }
 0x94c   :  { %3195 = vmatprep.subr.msk.mxu1 %vm61_vm0, %v2894_v14 }
 0x94f   :  { %3196 = vmatpush3.xpose.msk.msra.mxu1 %vm61_vm0, %v2894_v14 }
 0x950   :  { %3197 = vmatprep.subr.msk.mxu1 %vm61_vm0, %v2893_v49 }
 0x953   :  { %3198 = vmatpush3.xpose.msk.msra.mxu1 %vm61_vm0, %v2893_v49 }
 0x954   :  { %3207 = vmatprep.subr.mxu1 %v3354_v10 }
 0x956   :  { %3200 = vmatmul.mubr.msk.f32.vlgmr.msra.gmra.mxu1 %vm61_vm0, %v3715_v47 }
 0x957   :  { %3209 = vmatprep.mubr.msk.f32.mxu1 %vm3355_vm1, %v3354_v10 }
 0xa06   :  { %v3179_v53 = vpop.f32.mrf.mxu1  ;;  %v3190_v54 = vpop.f32.mrf.mxu0 }
 0xa07   :  { %v1598_v55 = vadd.f32 %v3190_v54, %v1513_v51  ;;  %v1507_v60 = vadd.f32 %v3179_v53, %v1416_v52 }
 0xa08   :  { %v1592_v56 = vpop.f32.mrf.mxu0  ;;  %v1501_v58 = vpop.f32.mrf.mxu1 }
 0xa09   :  { %v1593_v59 = vadd.f32 %v1592_v56, %v1513_v51  ;;  %1702 = vrot.lane.b32.xlu0 %v1598_v55, %s3356_s18  ;;  %3208 = vmatpush3.xpose.msk.msra.mxu1 %vm357_vm2, %v1598_v55  ;;  %v1502_v61 = vadd.f32 %v1501_v58, %v1416_v52 }
 0xa0a   :  { %3217 = vmatprep.subr.mxu1 %v3354_v10 }
 0xa0b   :  { %1700 = vrot.lane.b32.xlu1 %v1593_v59, %s3356_s18  ;;  %3203 = vmatpush3.xpose.msk.msra.mxu0 %vm357_vm2, %v1593_v59 }
 0xa0c   :  { %3210 = vmatmul.mubr.msk.f32.vlgmr.msra.gmra.mxu1 %vm357_vm2, %v1507_v60  ;;  %3212 = vmatprep.subr.mxu0 %v3354_v10 }
 0xa0d   :  { %3219 = vmatprep.mubr.msk.f32.mxu1 %vm3355_vm1, %v3354_v10 }
 0xa0e   :  { %3205 = vmatmul.mubr.msk.f32.vlgmr.msra.gmra.mxu0 %vm357_vm2, %v1502_v61 }
 0xa0f   :  { %1694 = vrot.lane.b32.xlu1 %v1502_v61, %s3356_s18  ;;  %3214 = vmatprep.mubr.msk.f32.mxu0 %vm3355_vm1, %v3354_v10 }
 0xa13   :  { %1696 = vrot.lane.b32.xlu1 %v1507_v60, %s3356_s18 }
 0xa16   :  { %v3201_v62 = vpop.f32.mrf.mxu1 }
 0xa17   :  { %v1689_v7 = vadd.f32 %v3201_v62, %v1604_v3 }
 0xa18   :  { %v1683_v1 = vpop.f32.mrf.mxu1 }
 0xa19   :  { %v3780_v5 = vadd.f32 %v1683_v1, %v1604_v3 }
 0xa7b   :  { %v1703_v63 = vpop.permute.xlu0 %1702 }
 0xa7c   :  { %3218 = vmatpush3.xpose.msk.msra.mxu1 %vm357_vm2, %v1703_v63 }
 0xa7d   :  { %v1701_v0 = vpop.permute.xlu1 %1700  ;;  %3227 = vmatprep.subr.mxu1 %v3354_v10 }
 0xa7e   :  { %3213 = vmatpush3.xpose.msk.msra.mxu0 %vm357_vm2, %v1701_v0 }
 0xa7f   :  { %3222 = vmatprep.subr.mxu0 %v3354_v10 }
 0xa81   :  { %v1695_v6 = vpop.permute.xlu1 %1694 }
 0xa82   :  { %3215 = vmatmul.mubr.msk.f32.vlgmr.msra.gmra.mxu0 %vm357_vm2, %v1695_v6 }
 0xa83   :  { %3223 = vmatpush3.msra.mxu0 %v3780_v5  ;;  %3224 = vmatprep.mubr.msk.f32.mxu0 %vm3355_vm1, %v3354_v10 }
 0xa84   :  { %3232 = vmatprep.subr.mxu0 %v3354_v10 }
 0xa85   :  { %v1697_v8 = vpop.permute.xlu1 %1696 }
 0xa86   :  { %3220 = vmatmul.mubr.msk.f32.vlgmr.msra.gmra.mxu1 %vm357_vm2, %v1697_v8 }
 0xa87   :  { %3228 = vmatpush3.msra.mxu1 %v1689_v7  ;;  %3229 = vmatprep.mubr.msk.f32.mxu1 %vm3355_vm1, %v3354_v10 }
 0xa88   :  { %3237 = vmatprep.subr.mxu1 %v3354_v10 }
 0xacc   :  { %v1856_v2 = vpop.f32.mrf.mxu1 }
 0xacd   :  { %v2009_v11 = vmul.f32 0.25, %v1856_v2 }
 0xace   :  { %v1782_v16 = vpop.f32.mrf.mxu0  ;;  %v3211_v17 = vpop.f32.mrf.mxu1 }
 0xacf   :  { %v2008_v18 = vmul.f32 0.25, %v1782_v16  ;;  %v2013_v19 = vsel %vm3524_vm3, %v2009_v11, -1e+30  ;;  %v2899_v17 = vld [vmem:[%s3955_s3 + $0x130] sm:$0xff] }
 0xad0   :  { %v3206_v9 = vpop.f32.mrf.mxu0  ;;  %v2019_v4 = vsel %vm664_vm4, %v2013_v19, -inf }
 0xad1   :  { %2020 = vmax.xlane.f32.xlu1 %v2019_v4  ;;  %v2012_v20 = vsel %vm3524_vm3, %v2008_v18, -1e+30 }
 0xad2   :  { %v2016_v21 = vsel %vm664_vm4, %v2012_v20, -inf }
 0xad3   :  { %2017 = vmax.xlane.f32.xlu0 %v2016_v21  ;;  %v2897_v21 = vld [vmem:[%s3955_s3 + $0x120] sm:$0xff] }
 0xb42   :  { %v1930_v22 = vpop.f32.mrf.mxu0 }
 0xb43   :  { %v2010_v23 = vmul.f32 0.25, %v1930_v22 }
 0xb44   :  { %v3216_v24 = vpop.f32.mrf.mxu0 }
 0xb45   :  { %v2014_v25 = vsel %vm3524_vm3, %v2010_v23, -1e+30 }
 0xb46   :  { %v2004_v26 = vpop.f32.mrf.mxu1  ;;  %v2022_v27 = vsel %vm664_vm4, %v2014_v25, -inf }
 0xb47   :  { %v2011_v28 = vmul.f32 0.25, %v2004_v26  ;;  %2023 = vmax.xlane.f32.xlu0 %v2022_v27 }
 0xb48   :  { %v3221_v29 = vpop.f32.mrf.mxu1 }
 0xb49   :  { %v2015_v30 = vsel %vm3524_vm3, %v2011_v28, -1e+30 }
 0xb4a   :  { %v2025_v33 = vsel %vm664_vm4, %v2015_v30, -inf }
 0xb4b   :  { %2026 = vmax.xlane.f32.xlu0 %v2025_v33 }
 0xb5a   :  { %v2021_v37 = vpop.xlane.xlu1 %2020 }
 0xb5b   :  { %v2029_v38 = vsub.f32 %v2013_v19, %v2021_v37  ;;  %v2898_v19 = vld [vmem:[%s3955_s3 + $0x128] sm:$0xff] }
 0xb5c   :  { %v2018_v40 = vpop.xlane.xlu0 %2017 }
 0xb5d   :  { %v2034_v41 = vmul.f32 1.442695, %v2029_v38  ;;  %v2028_v42 = vsub.f32 %v2012_v20, %v2018_v40 }
 0xb5f   :  { %3304 = vpow2.f32 %v2034_v41  ;;  %v2032_v43 = vmul.f32 1.442695, %v2028_v42 }
 0xb61   :  { %3306 = vpow2.f32 %v2032_v43 }
 0xb6c   :  { %v3305_v44 = vpop.eup %3304 }
 0xb6d   :  { %v2043_v45 = vsel %vm664_vm4, %v3305_v44, 0.0 }
 0xb6e   :  { %v3307_v48 = vpop.eup %3306  ;;  %2044 = vadd.xlane.f32.xlu0 %v2043_v45 }
 0xb6f   :  { %v2040_v14 = vsel %vm664_vm4, %v3307_v48, 0.0 }
 0xb70   :  { %2041 = vadd.xlane.f32.xlu1 %v2040_v14 }
 0xbd0   :  { %v2024_v36 = vpop.xlane.xlu0 %2023 }
 0xbd1   :  { %v2030_v49 = vsub.f32 %v2014_v25, %v2024_v36 }
 0xbd3   :  { %v2036_v51 = vmul.f32 1.442695, %v2030_v49 }
 0xbd4   :  { %v2027_v52 = vpop.xlane.xlu0 %2026 }
 0xbd5   :  { %3308 = vpow2.f32 %v2036_v51  ;;  %v2031_v53 = vsub.f32 %v2015_v30, %v2027_v52  ;;  %v2365_v30 = vrot.slane %v3753_v50, %v1013_v57 }
 0xbd7   :  { %v2038_v54 = vmul.f32 1.442695, %v2031_v53 }
 0xbd9   :  { %3310 = vpow2.f32 %v2038_v54  ;;  %v2903_v54 = vld [vmem:[%s3955_s3 + $0x150] sm:$0xff] }
 0xbe2   :  { %v3309_v55 = vpop.eup %3308 }
 0xbe3   :  { %v2046_v56 = vsel %vm664_vm4, %v3309_v55, 0.0 }
 0xbe4   :  { %2047 = vadd.xlane.f32.xlu1 %v2046_v56  ;;  %v2901_v56 = vld [vmem:[%s3955_s3 + $0x140] sm:$0xff] }
 0xbe6   :  { %v3311_v58 = vpop.eup %3310 }
 0xbe7   :  { %v2049_v59 = vsel %vm664_vm4, %v3311_v58, 0.0 }
 0xbe8   :  { %2050 = vadd.xlane.f32.xlu0 %v2049_v59  ;;  %v2907_v59 = vld [vmem:[%s3955_s3 + $0x170] sm:$0xff] }
 0xbf5   :  { %1706 = vrot.lane.b32.xlu1 %v3780_v5, %s3356_s18 }
 0xbf7   :  { %v2045_v60 = vpop.xlane.xlu0 %2044 }
 0xbf8   :  { %3312 = vrcp.f32 %v2045_v60 }
 0xbf9   :  { %v2042_v61 = vpop.xlane.xlu1 %2041 }
 0xbfa   :  { %3314 = vrcp.f32 %v2042_v61 }
 0xbfe   :  { %1708 = vrot.lane.b32.xlu0 %v1689_v7, %s3356_s18 }
 0xc05   :  { %v3313_v62 = vpop.eup %3312 }
 0xc06   :  { %v2057_v63 = vmul.f32 %v3313_v62, %v3305_v44 }
 0xc07   :  { %v3315_v0 = vpop.eup %3314 }
 0xc08   :  { %3230 = vmatmul.mubr.msk.f32.vlgmr.msra.gmra.mxu1 %vm664_vm4, %v2057_v63  ;;  %v2056_v1 = vmul.f32 %v3315_v0, %v3307_v48 }
 0xc09   :  { %3239 = vmatprep.mubr.msk.f32.mxu1 %vm3355_vm1, %v3354_v10 }
 0xc0a   :  { %3225 = vmatmul.mubr.msk.f32.vlgmr.msra.gmra.mxu0 %vm664_vm4, %v2056_v1 }
 0xc0b   :  { %3234 = vmatprep.mubr.msk.f32.mxu0 %vm3355_vm1, %v3354_v10  ;;  %v2900_v10 = vld [vmem:[%s3955_s3 + $0x138] sm:$0xff] }
 0xc6d   :  { %v2048_v3 = vpop.xlane.xlu1 %2047 }
 0xc6e   :  { %3316 = vrcp.f32 %v2048_v3  ;;  %v2490_v3 = vrot.slane %v3753_v50, %v1139_v31  ;;  %v2906_v31 = vld [vmem:[%s3955_s3 + $0x168] sm:$0xff] }
 0xc71   :  { %v1707_v5 = vpop.permute.xlu1 %1706  ;;  %v2051_v6 = vpop.xlane.xlu0 %2050 }
 0xc72   :  { %3318 = vrcp.f32 %v2051_v6  ;;  %3233 = vmatpush3.msra.mxu0 %v1707_v5 }
 0xc73   :  { %3242 = vmatprep.subr.msk.mxu0 %vm61_vm0, %v2900_v10 }
 0xc75   :  { %v1709_v7 = vpop.permute.xlu0 %1708 }
 0xc76   :  { %3238 = vmatpush3.msra.mxu1 %v1709_v7  ;;  %v2496_v7 = vrot.slane %v3753_v50, %v1145_v32  ;;  %v2905_v32 = vld [vmem:[%s3955_s3 + $0x160] sm:$0xff] }
 0xc7b   :  { %v3317_v8 = vpop.eup %3316 }
 0xc7c   :  { %v2058_v2 = vmul.f32 %v3317_v8, %v3309_v55  ;;  %v2902_v55 = vld [vmem:[%s3955_s3 + $0x148] sm:$0xff] }
 0xc7e   :  { %3235 = vmatmul.mubr.msk.f32.vlgmr.msra.gmra.mxu0 %vm664_vm4, %v2058_v2 }
 0xc7f   :  { %v3319_v11 = vpop.eup %3318  ;;  %3243 = vmatpush3.xpose.msk.msra.mxu0 %vm61_vm0, %v2900_v10 }
 0xc80   :  { %v2059_v16 = vmul.f32 %v3319_v11, %v3311_v58  ;;  %3244 = vmatprep.subr.msk.mxu0 %vm61_vm0, %v2899_v17  ;;  %v2908_v58 = vld [vmem:[%s3955_s3 + $0x178] sm:$0xff] }
 0xc82   :  { %3240 = vmatmul.mubr.msk.f32.vlgmr.msra.gmra.mxu1 %vm664_vm4, %v2059_v16 }
 0xc83   :  { %3245 = vmatpush3.xpose.msk.msra.mxu0 %vm61_vm0, %v2899_v17 }
 0xc84   :  { %3246 = vmatprep.subr.msk.mxu0 %vm61_vm0, %v2898_v19 }
 0xc87   :  { %3247 = vmatpush3.xpose.msk.msra.mxu0 %vm61_vm0, %v2898_v19 }
 0xc88   :  { %3248 = vmatprep.subr.msk.mxu0 %vm61_vm0, %v2897_v21 }
 0xc8b   :  { %3249 = vmatpush3.xpose.msk.msra.mxu0 %vm61_vm0, %v2897_v21 }
 0xc8c   :  { %3264 = vmatprep.subr.msk.mxu0 %vm61_vm0, %v2908_v58 }
 0xcc8   :  { %v2202_v18 = vpop.f32.mrf.mxu1 }
 0xcca   :  { %v2129_v9 = vpop.f32.mrf.mxu0  ;;  %v3231_v4 = vpop.f32.mrf.mxu1 }
 0xccc   :  { %v3226_v20 = vpop.f32.mrf.mxu0 }
 0xd3e   :  { %v2275_v22 = vpop.f32.mrf.mxu0 }
 0xd3f   :  { %2354 = vrot.lane.b32.xlu1 %v2275_v22, %s3357_s11 }
 0xd40   :  { %v3236_v23 = vpop.f32.mrf.mxu0 }
 0xd42   :  { %v2348_v24 = vpop.f32.mrf.mxu1 }
 0xd43   :  { %2356 = vrot.lane.b32.xlu1 %v2348_v24, %s3357_s11 }
 0xd44   :  { %v3241_v25 = vpop.f32.mrf.mxu1 }
 0xdb1   :  { %v2355_v26 = vpop.permute.xlu1 %2354 }
 0xdb2   :  { %v2360_v27 = vsel %vm357_vm2, %v2129_v9, %v2355_v26 }
 0xdb3   :  { %3250 = vmatprep.mubr.msk.f32.mxu0 %vm61_vm0, %v2360_v27 }
 0xdb5   :  { %v2357_v28 = vpop.permute.xlu1 %2356 }
 0xdb6   :  { %v2361_v29 = vsel %vm357_vm2, %v2202_v18, %v2357_v28  ;;  %v2910_v18 = vld [vmem:[%s3956_s4 + $0x18] sm:$0x3] }
 0xdb7   :  { %3251 = vmatmul.mubr.msk.f32.vlgmr.msra.gmra.mxu0 %vm61_vm0, %v2361_v29  ;;  %v2502_v19 = vrot.slane %v2910_v18, %v3468_v15  ;;  %v2601_v24 = vrot.slane %v2910_v18, %v3460_v13 }
 0xdb8   :  { %3265 = vmatpush3.xpose.msk.msra.mxu0 %vm61_vm0, %v2908_v58 }
 0xdb9   :  { %3266 = vmatprep.subr.msk.mxu0 %vm61_vm0, %v2907_v59 }
 0xdbc   :  { %3267 = vmatpush3.xpose.msk.msra.mxu0 %vm61_vm0, %v2907_v59 }
 0xdbd   :  { %3268 = vmatprep.subr.msk.mxu0 %vm61_vm0, %v2906_v31 }
 0xdc0   :  { %3269 = vmatpush3.xpose.msk.msra.mxu0 %vm61_vm0, %v2906_v31 }
 0xdc1   :  { %3270 = vmatprep.subr.msk.mxu0 %vm61_vm0, %v2905_v32 }
 0xdc4   :  { %3271 = vmatpush3.xpose.msk.msra.mxu0 %vm61_vm0, %v2905_v32 }
 0xe77   :  { %v3252_v33 = vpop.f32.mrf.mxu0 }
 0xe78   :  { %v2456_v37 = vadd.f32 %v3252_v33, %v2365_v30 }
 0xe79   :  { %v2450_v38 = vpop.f32.mrf.mxu0 }
 0xe7a   :  { %v2451_v40 = vadd.f32 %v2450_v38, %v2365_v30  ;;  %v2460_v41 = vadd.f32 %v2456_v37, %v3715_v47 }
 0xe7c   :  { %v2464_v42 = vsel %vm61_vm0, %v2460_v41, 0.0  ;;  %v2459_v43 = vadd.f32 %v2451_v40, %v3713_v46  ;;  %v2904_v46 = vld [vmem:[%s3955_s3 + $0x158] sm:$0xff] }
 0xe7d   :  { %2465 = vadd.xlane.f32.xlu1 %v2464_v42  ;;  %3253 = vmatprep.subr.msk.mxu1 %vm61_vm0, %v2904_v46 }
 0xe7e   :  { %v2461_v44 = vsel %vm61_vm0, %v2459_v43, 0.0  ;;  %3254 = vmatpush3.xpose.msk.msra.mxu1 %vm61_vm0, %v2904_v46  ;;  %v2726_v46 = vrot.slane %v3753_v50, %v1375_v35 }
 0xe7f   :  { %2462 = vadd.xlane.f32.xlu0 %v2461_v44  ;;  %3255 = vmatprep.subr.msk.mxu1 %vm61_vm0, %v2903_v54 }
 0xe82   :  { %3256 = vmatpush3.xpose.msk.msra.mxu1 %vm61_vm0, %v2903_v54 }
 0xe83   :  { %3257 = vmatprep.subr.msk.mxu1 %vm61_vm0, %v2902_v55 }
 0xe86   :  { %3258 = vmatpush3.xpose.msk.msra.mxu1 %vm61_vm0, %v2902_v55 }
 0xe87   :  { %3259 = vmatprep.subr.msk.mxu1 %vm61_vm0, %v2901_v56 }
 0xe8a   :  { %3260 = vmatpush3.xpose.msk.msra.mxu1 %vm61_vm0, %v2901_v56  ;;  %v2732_v56 = vrot.slane %v3753_v50, %v1381_v39 }
 0xf06   :  { %v2466_v45 = vpop.xlane.xlu1 %2465 }
 0xf07   :  { %v2468_v48 = vmul.f32 0.03125, %v2466_v45 }
 0xf08   :  { %v2463_v14 = vpop.xlane.xlu0 %2462 }
 0xf09   :  { %v2467_v36 = vmul.f32 0.03125, %v2463_v14  ;;  %v2470_v49 = vsub.f32 %v2460_v41, %v2468_v48 }
 0xf0b   :  { %v2469_v57 = vsub.f32 %v2459_v43, %v2467_v36  ;;  %v2472_v53 = vmul.f32 %v2470_v49, %v2470_v49 }
 0xf0d   :  { %v2471_v51 = vmul.f32 %v2469_v57, %v2469_v57  ;;  %v2476_v47 = vsel %vm61_vm0, %v2472_v53, 0.0 }
 0xf0f   :  { %v2473_v52 = vsel %vm61_vm0, %v2471_v51, 0.0 }
 0xf10   :  { %2474 = vadd.xlane.f32.xlu0 %v2473_v52 }
 0xf14   :  { %2477 = vadd.xlane.f32.xlu0 %v2476_v47 }
 0xf99   :  { %v2475_v60 = vpop.xlane.xlu0 %2474 }
 0xf9a   :  { %v2479_v61 = vmul.f32 0.03125, %v2475_v60 }
 0xf9c   :  { %v2481_v62 = vadd.f32 1e-08, %v2479_v61 }
 0xf9d   :  { %v2478_v63 = vpop.xlane.xlu0 %2477 }
 0xf9e   :  { %3320 = vrsqrt.f32 %v2481_v62  ;;  %v2480_v0 = vmul.f32 0.03125, %v2478_v63 }
 0xfa0   :  { %v2482_v1 = vadd.f32 1e-08, %v2480_v0 }
 0xfa2   :  { %3322 = vrsqrt.f32 %v2482_v1 }
 0xfab   :  { %v3321_v5 = vpop.eup %3320 }
 0xfac   :  { %v2485_v6 = vmul.f32 %v3321_v5, %v2469_v57 }
 0xfae   :  { %v2491_v8 = vmul.f32 %v2490_v3, %v2485_v6 }
 0xfaf   :  { %v3323_v2 = vpop.eup %3322 }
 0xfb0   :  { %v2486_v11 = vmul.f32 %v3323_v2, %v2470_v49  ;;  %v2497_v16 = vadd.f32 %v2496_v7, %v2491_v8 }
 0xfb2   :  { %v2492_v10 = vmul.f32 %v2490_v3, %v2486_v11  ;;  %3261 = vmatprep.mubr.msk.f32.mxu1 %vm61_vm0, %v2497_v16 }
 0xfb4   :  { %v2498_v17 = vadd.f32 %v2496_v7, %v2492_v10 }
 0xfb6   :  { %3262 = vmatmul.mubr.msk.f32.vlgmr.msra.gmra.mxu1 %vm61_vm0, %v2498_v17 }
0x1076   :  { %v3263_v9 = vpop.f32.mrf.mxu1 }
0x1077   :  { %v2593_v4 = vadd.f32 %v3263_v9, %v2502_v19 }
0x1078   :  { %v2587_v20 = vpop.f32.mrf.mxu1 }
0x1079   :  { %v2588_v21 = vadd.f32 %v2587_v20, %v2502_v19  ;;  %v2597_v23 = vmax.f32 %v2593_v4, 0.0  ;;  %v2735_v19 = vld [vmem:[%s3957_s5] sm:$0x3] }
0x107a   :  { %v2765_v9 = vrot.slane %v2735_v19, %v3468_v15  ;;  %v2785_v15 = vld [vmem:[%s3954_s2 + $0x8] sm:$0xff] }
0x107b   :  { %v2596_v22 = vmax.f32 %v2588_v21, 0.0  ;;  %v2771_v21 = vrot.slane %v2735_v19, %v3460_v13  ;;  %v2784_v13 = vld [vmem:[%s3954_s2] sm:$0xff] }
0x107d   :  { %3272 = vmatprep.mubr.msk.f32.mxu0 %vm61_vm0, %v2596_v22 }
0x107e   :  { %3273 = vmatmul.mubr.msk.f32.vlgmr.msra.gmra.mxu0 %vm61_vm0, %v2597_v23 }
0x113e   :  { %v3274_v25 = vpop.f32.mrf.mxu0 }
0x113f   :  { %v2692_v26 = vadd.f32 %v3274_v25, %v2601_v24  ;;  %v2775_v25 = vld [vmem:[%s3953_s1 + $0x8] sm:$0xff] }
0x1140   :  { %v2686_v27 = vpop.f32.mrf.mxu0 }
0x1141   :  { %v2687_v28 = vadd.f32 %v2686_v27, %v2601_v24  ;;  %v2696_v29 = vadd.f32 %v2692_v26, %v2498_v17 }
0x1143   :  { %v2700_v30 = vsel %vm61_vm0, %v2696_v29, 0.0  ;;  %v2695_v33 = vadd.f32 %v2687_v28, %v2497_v16  ;;  %v2774_v28 = vld [vmem:[%s3953_s1] sm:$0xff]  ;;  %s3358_s1 = smov [#allocation2]  }
0x1144   :  { %2701 = vadd.xlane.f32.xlu0 %v2700_v30  ;;  %s2829_s2 = sshll.u32 %s3358_s1, 4  ;;  %s2830_s2 = int_to_ptr.vmem [resolvable:$true] %s2829_s2 }
0x1145   :  { %v2697_v37 = vsel %vm61_vm0, %v2695_v33, 0.0  ;;  %s3332_s11 = scalar_lea.vmem %s2830_s2, 32  ;;  %p3337_p1 = scmp.lt.s32.totalorder %s2830_s2, %s2830_s2 }
0x1146   :  { %2698 = vadd.xlane.f32.xlu1 %v2697_v37  ;;  %p3333_p0 = scmp.ne.s32.totalorder %s2830_s2, %s3332_s11  ;;  %p3338_p2 = scmp.lt.s32.totalorder %s3332_s11, %s3332_s11 }
0x1148   :  { %p3339_p3 = por %p3338_p2, %p3337_p1 }
0x114a   :  { %p3340_p4 = pnand %p3339_p3, %p3333_p0 }
0x11cd   :  { %v2702_v38 = vpop.xlane.xlu0 %2701 }
0x11ce   :  { %v2704_v40 = vmul.f32 0.03125, %v2702_v38 }
0x11cf   :  { %v2699_v41 = vpop.xlane.xlu1 %2698 }
0x11d0   :  { %v2706_v42 = vsub.f32 %v2696_v29, %v2704_v40  ;;  %v2703_v43 = vmul.f32 0.03125, %v2699_v41 }
0x11d2   :  { %v2705_v44 = vsub.f32 %v2695_v33, %v2703_v43  ;;  %v2708_v45 = vmul.f32 %v2706_v42, %v2706_v42 }
0x11d4   :  { %v2712_v48 = vsel %vm61_vm0, %v2708_v45, 0.0  ;;  %v2707_v14 = vmul.f32 %v2705_v44, %v2705_v44 }
0x11d5   :  { %2713 = vadd.xlane.f32.xlu0 %v2712_v48 }
0x11d6   :  { %v2709_v36 = vsel %vm61_vm0, %v2707_v14, 0.0  ;;  %v2798_v14 = vsub.s32 %v3520_v34, %v3457_v12 }
0x11d7   :  { %2710 = vadd.xlane.f32.xlu1 %v2709_v36 }
0x125e   :  { %v2714_v49 = vpop.xlane.xlu0 %2713 }
0x125f   :  { %v2716_v57 = vmul.f32 0.03125, %v2714_v49 }
0x1260   :  { %v2711_v51 = vpop.xlane.xlu1 %2710 }
0x1261   :  { %v2718_v52 = vadd.f32 1e-08, %v2716_v57  ;;  %v2715_v53 = vmul.f32 0.03125, %v2711_v51 }
0x1263   :  { %3324 = vrsqrt.f32 %v2718_v52  ;;  %v2717_v47 = vadd.f32 1e-08, %v2715_v53 }
0x1265   :  { %3326 = vrsqrt.f32 %v2717_v47 }
0x1270   :  { %v3325_v54 = vpop.eup %3324 }
0x1271   :  { %v2722_v55 = vmul.f32 %v3325_v54, %v2706_v42 }
0x1272   :  { %v3327_v58 = vpop.eup %3326 }
0x1273   :  { %v2728_v59 = vmul.f32 %v2726_v46, %v2722_v55  ;;  %v2721_v60 = vmul.f32 %v3327_v58, %v2705_v44  ;;  %v2809_v44 = vadd.s32 4294967288, %v3520_v34 }
0x1275   :  { %v2734_v61 = vadd.f32 %v2732_v56, %v2728_v59  ;;  %v2727_v62 = vmul.f32 %v2726_v46, %v2721_v60  ;;  %v2812_v36 = vsub.s32 %v2809_v44, %v3457_v12 }
0x1277   :  { %v2739_v63 = vsel %vm61_vm0, %v2734_v61, 0.0  ;;  %v2733_v0 = vadd.f32 %v2732_v56, %v2727_v62 }
0x1278   :  { %2740 = vadd.xlane.f32.xlu0 %v2739_v63 }
0x1279   :  { %v2736_v1 = vsel %vm61_vm0, %v2733_v0, 0.0 }
0x127a   :  { %2737 = vadd.xlane.f32.xlu1 %v2736_v1 }
0x1301   :  { %v2741_v3 = vpop.xlane.xlu0 %2740 }
0x1302   :  { %v2743_v35 = vmul.f32 0.03125, %v2741_v3 }
0x1303   :  { %v2738_v5 = vpop.xlane.xlu1 %2737 }
0x1304   :  { %v2745_v6 = vsub.f32 %v2734_v61, %v2743_v35  ;;  %v2742_v7 = vmul.f32 0.03125, %v2738_v5 }
0x1306   :  { %v2744_v8 = vsub.f32 %v2733_v0, %v2742_v7  ;;  %v2747_v2 = vmul.f32 %v2745_v6, %v2745_v6 }
0x1308   :  { %v2751_v39 = vsel %vm61_vm0, %v2747_v2, 0.0  ;;  %v2746_v50 = vmul.f32 %v2744_v8, %v2744_v8 }
0x1309   :  { %2752 = vadd.xlane.f32.xlu0 %v2751_v39 }
0x130a   :  { %v2748_v11 = vsel %vm61_vm0, %v2746_v50, 0.0 }
0x130b   :  { %2749 = vadd.xlane.f32.xlu1 %v2748_v11 }
0x1392   :  { %v2753_v16 = vpop.xlane.xlu0 %2752 }
0x1393   :  { %v2755_v10 = vmul.f32 0.03125, %v2753_v16 }
0x1394   :  { %v2750_v17 = vpop.xlane.xlu1 %2749 }
0x1395   :  { %v2757_v31 = vadd.f32 1e-08, %v2755_v10  ;;  %v2754_v32 = vmul.f32 0.03125, %v2750_v17 }
0x1397   :  { %3328 = vrsqrt.f32 %v2757_v31  ;;  %v2756_v18 = vadd.f32 1e-08, %v2754_v32 }
0x1399   :  { %3330 = vrsqrt.f32 %v2756_v18 }
0x13a4   :  { %v3329_v4 = vpop.eup %3328 }
0x13a5   :  { %v2761_v20 = vmul.f32 %v3329_v4, %v2745_v6 }
0x13a6   :  { %v3331_v22 = vpop.eup %3330 }
0x13a7   :  { %v2767_v23 = vmul.f32 %v2765_v9, %v2761_v20  ;;  %v2760_v24 = vmul.f32 %v3331_v22, %v2744_v8 }
0x13a9   :  { %v2773_v26 = vadd.f32 %v2771_v21, %v2767_v23  ;;  %v2766_v27 = vmul.f32 %v2765_v9, %v2760_v24 }
0x13ab   :  { %v2777_v29 = vmul.f32 %v2775_v25, %v2773_v26  ;;  %v2772_v30 = vadd.f32 %v2771_v21, %v2766_v27  ;;  %v2787_v38 = vmul.f32 %v2785_v15, %v2773_v26 }
0x13ad   :  { %v2781_v33 = vsel %vm61_vm0, %v2777_v29, 0.0  ;;  %v2776_v37 = vmul.f32 %v2774_v28, %v2772_v30  ;;  %v2786_v41 = vmul.f32 %v2784_v13, %v2772_v30  ;;  %v2791_v42 = vsel %vm61_vm0, %v2787_v38, 0.0 }
0x13ae   :  { %2782 = vadd.xlane.f32.xlu0 %v2781_v33 }
0x13af   :  { %v2778_v40 = vsel %vm61_vm0, %v2776_v37, 0.0  ;;  %v2788_v43 = vsel %vm61_vm0, %v2786_v41, 0.0 }
0x13b0   :  { %2779 = vadd.xlane.f32.xlu1 %v2778_v40 }
0x13b2   :  { %2792 = vadd.xlane.f32.xlu0 %v2791_v42 }
0x13b4   :  { %2789 = vadd.xlane.f32.xlu1 %v2788_v43 }
0x1437   :  { %v2783_v45 = vpop.xlane.xlu0 %2782 }
0x1438   :  { %v2803_v52 = vrot.slane %v2783_v45, %v2798_v14 }
0x1439   :  { %v2780_v48 = vpop.xlane.xlu1 %2779 }
0x143a   :  { %v2799_v57 = vrot.slane %v2780_v48, %v2798_v14 }
0x143b   :  { %v2793_v49 = vpop.xlane.xlu0 %2792 }
0x143c   :  { %v2817_v53 = vrot.slane %v2793_v49, %v2812_v36  ;;  %v2805_v46 = vsel %vm2804_vm5, %v2803_v52, %v2799_v57 }
0x143d   :  { %v2790_v51 = vpop.xlane.xlu1 %2789 }
0x143e   :  { %v2813_v47 = vrot.slane %v2790_v51, %v2812_v36 }
0x1440   :  { %v2818_v54 = vsel %vm2804_vm5, %v2817_v53, %v2813_v47 }
0x1441   :  { %v2820_v55 = vsel %vm664_vm4, %v2805_v46, %v2818_v54 }
0x1442   :  { %v2821_v56 = vsel %vm357_vm2, %v2820_v55, 0.0 }
0x1443   :  { %2822 = vst [vmem:[#allocation2] sm:$0x3] %v2821_v56 }
0x1444   :  { %3343 = shalt.err (!%p3340_p4)
}
0x1445   :  { %2832 = dma.vmem_to_hbm [thread:$0]  %s2830_s2, 32, %s3958_s6, [#allocation3]  }
0x1446   :  { %3352 = dma.done.wait [#allocation3], 32  }
0x1447   :  { %3353 = vsyncadd [#allocation3], 4294967264 }
0x1448   :  { %2836 = vsyncpa [#allocation3], 1 }

</bundles_post_ra>
